<compile_context>
chip_gen: v6e
topology: v6e:2x2x1
jax: 0.10.0
libtpu: 0.0.40
codegen_flags: <defaults>
</compile_context>

<pallas_src>
import functools

import jax
import jax.numpy as jnp
from jax.experimental import pallas as pl
from jax.experimental.pallas import tpu as pltpu

SEQUENCE_LENGTH = 7
LN_EPS = 1e-5


def _layer_norm(x, w, b):
    mu = jnp.mean(x, axis=-1, keepdims=True)
    xc = x - mu
    var = jnp.mean(xc * xc, axis=-1, keepdims=True)
    return xc * jax.lax.rsqrt(var + LN_EPS) * w + b


def encoder_kernel(
    x_ref, wemb_ref, bemb_ref, pos_ref,
    wq_ref, bq_ref, wk_ref, bk_ref, wv_ref, bv_ref,
    wo_ref, bo_ref, ln1w_ref, ln1b_ref,
    w1_ref, b1_ref, w2_ref, b2_ref, ln2w_ref, ln2b_ref,
    wout_ref, bout_ref,
    out_ref, h_scr, *, nhead):
    """One (batch-element, layer) grid step."""
    l = pl.program_id(1)
    num_layers = pl.num_programs(1)
    S, H = h_scr.shape
    hd = H // nhead

    # ---- input embedding + positional encoding (first layer step only) ----
    @pl.when(l == 0)
    def _embed():
        h0 = jnp.dot(x_ref[...], wemb_ref[...],
                     preferred_element_type=jnp.float32)
        h_scr[...] = h0 + bemb_ref[...] + pos_ref[...]

    h = h_scr[...]                                                  # (S, H)

    # ---- self-attention: all heads batched on the leading dim ------------
    hb = jnp.broadcast_to(h[None], (nhead, S, H))                   # (nh,S,H)
    qh = jnp.einsum('nsh,nhd->nsd', hb, wq_ref[...],
                    preferred_element_type=jnp.float32) + bq_ref[...]
    kh = jnp.einsum('nsh,nhd->nsd', hb, wk_ref[...],
                    preferred_element_type=jnp.float32) + bk_ref[...]
    vh = jnp.einsum('nsh,nhd->nsd', hb, wv_ref[...],
                    preferred_element_type=jnp.float32) + bv_ref[...]

    # scores (scale already folded into wq/bq), per-head softmax
    s = jnp.einsum('nqd,nkd->nqk', qh, kh,
                   preferred_element_type=jnp.float32)              # (nh,S,S)
    s = s - jnp.max(s, axis=-1, keepdims=True)
    p = jnp.exp(s)
    p = p * pl.reciprocal(jnp.sum(p, axis=-1, keepdims=True), approx=True)

    ah = jnp.einsum('nqk,nkd->nqd', p, vh,
                    preferred_element_type=jnp.float32)             # (nh,S,hd)
    # output projection with head reassembly folded into wo (nh,hd,H)
    ao = jnp.einsum('nqd,ndh->nqh', ah, wo_ref[...],
                    preferred_element_type=jnp.float32)             # (nh,S,H)
    attn = jnp.sum(ao, axis=0) + bo_ref[...]                        # (S,H)
    h = _layer_norm(h + attn, ln1w_ref[...], ln1b_ref[...])

    # ---- feed-forward: Linear -> ReLU -> Linear ---------------------------
    ff = jnp.dot(h, w1_ref[...], preferred_element_type=jnp.float32) + b1_ref[...]
    ff = jnp.maximum(ff, 0.0)
    ff = jnp.dot(ff, w2_ref[...], preferred_element_type=jnp.float32) + b2_ref[...]
    h = _layer_norm(h + ff, ln2w_ref[...], ln2b_ref[...])

    h_scr[...] = h

    # ---- AdaptiveAvgPool1d(1) + output Linear (last layer step only) -----
    @pl.when(l == num_layers - 1)
    def _finalize():
        pooled = jnp.dot(jnp.full((1, S), 1.0 / S, jnp.float32), h,
                         preferred_element_type=jnp.float32)        # (1,H) via MXU
        out = jnp.dot(pooled, wout_ref[...],
                      preferred_element_type=jnp.float32) + bout_ref[...]
        out_ref[...] = out.astype(out_ref.dtype)


def transformer_feature_extractor(x, params, *, nhead, num_layers):
    B, S, Din = x.shape
    H = params["wemb"].shape[1]
    hd = H // nhead
    L = num_layers
    dout = params["wout"].shape[1]
    dpad = ((dout + 127) // 128) * 128          # lane-dense output slab
    scale = 1.0 / (hd ** 0.5)

    # ------- wrapper-side layout plumbing (static; no in-kernel reshapes) --
    wqkv, bqkv = params["wqkv"], params["bqkv"]

    def split_w(w):   # (L,H,H) -> (L, nhead, H, hd)
        return w.reshape(L, H, nhead, hd).transpose(0, 2, 1, 3)

    def split_b(b):   # (L,H)   -> (L, nhead, 1, hd)
        return b.reshape(L, nhead, 1, hd)

    wq = split_w(wqkv[:, :, 0:H]) * scale       # fold 1/sqrt(hd) into Q proj
    wk = split_w(wqkv[:, :, H:2 * H])
    wv = split_w(wqkv[:, :, 2 * H:3 * H])
    bq = split_b(bqkv[:, 0:H]) * scale
    bk = split_b(bqkv[:, H:2 * H])
    bv = split_b(bqkv[:, 2 * H:3 * H])
    wo = params["wo"].reshape(L, nhead, hd, H)  # head reassembly folded in
    bo = params["bo"].reshape(L, 1, H)
    ln1w = params["ln1w"].reshape(L, 1, H)
    ln1b = params["ln1b"].reshape(L, 1, H)
    w1 = params["w1"]
    b1 = params["b1"].reshape(L, 1, 4 * H)
    w2 = params["w2"]
    b2 = params["b2"].reshape(L, 1, H)
    ln2w = params["ln2w"].reshape(L, 1, H)
    ln2b = params["ln2b"].reshape(L, 1, H)
    wout_p = jnp.pad(params["wout"], ((0, 0), (0, dpad - dout)))
    bout_p = jnp.pad(params["bout"], ((0, 0), (0, dpad - dout)))

    args = (x, params["wemb"], params["bemb"], params["pos"],
            wq, bq, wk, bk, wv, bv, wo, bo, ln1w, ln1b,
            w1, b1, w2, b2, ln2w, ln2b, wout_p, bout_p)

    def full_spec(shape):
        nz = (0,) * len(shape)
        return pl.BlockSpec(shape, lambda b, l, _nz=nz: _nz)

    def layer_spec(shape):                      # stream per-layer weights
        nz = (0,) * len(shape)
        return pl.BlockSpec((None,) + shape, lambda b, l, _nz=nz: (l,) + _nz)

    in_specs = [
        pl.BlockSpec((None, S, Din), lambda b, l: (b, 0, 0)),   # x
        full_spec((Din, H)),                                    # wemb
        full_spec((1, H)),                                      # bemb
        full_spec((S, H)),                                      # pos
        layer_spec((nhead, H, hd)),                             # wq
        layer_spec((nhead, 1, hd)),                             # bq
        layer_spec((nhead, H, hd)),                             # wk
        layer_spec((nhead, 1, hd)),                             # bk
        layer_spec((nhead, H, hd)),                             # wv
        layer_spec((nhead, 1, hd)),                             # bv
        layer_spec((nhead, hd, H)),                             # wo
        layer_spec((1, H)),                                     # bo
        layer_spec((1, H)),                                     # ln1w
        layer_spec((1, H)),                                     # ln1b
        layer_spec((H, 4 * H)),                                 # w1
        layer_spec((1, 4 * H)),                                 # b1
        layer_spec((4 * H, H)),                                 # w2
        layer_spec((1, H)),                                     # b2
        layer_spec((1, H)),                                     # ln2w
        layer_spec((1, H)),                                     # ln2b
        full_spec((H, dpad)),                                   # wout (padded)
        full_spec((1, dpad)),                                   # bout (padded)
    ]
    out_specs = pl.BlockSpec((None, 1, dpad), lambda b, l: (b, 0, 0))

    kernel = functools.partial(encoder_kernel, nhead=nhead)
    out = pl.pallas_call(
        kernel,
        out_shape=jax.ShapeDtypeStruct((B, 1, dpad), jnp.float32),
        grid_spec=pltpu.PrefetchScalarGridSpec(
            num_scalar_prefetch=0,
            grid=(B, L),
            in_specs=in_specs,
            out_specs=out_specs,
            scratch_shapes=[pltpu.VMEM((S, H), jnp.float32)]),   # h carry
        compiler_params=pltpu.CompilerParams(
            dimension_semantics=("parallel", "arbitrary")),
    )(*args)
    return out[:, 0, :dout]


# -------------------- deterministic parameter init ------------------------
def init_params(key, input_dim, nhead, hidden_dim, num_layers, output_dim):
    H = hidden_dim
    ks = jax.random.split(key, 17)

    def u(k, shape, scale=0.1):
        return jax.random.uniform(k, shape, jnp.float32, -scale, scale)

    return dict(
        wemb=u(ks[0], (input_dim, H)),          # Linear weights pre-transposed
        bemb=u(ks[1], (1, H)),
        pos=u(ks[2], (SEQUENCE_LENGTH, H)),
        wqkv=u(ks[3], (num_layers, H, 3 * H)),
        bqkv=u(ks[4], (num_layers, 3 * H)),
        wo=u(ks[5], (num_layers, H, H)),
        bo=u(ks[6], (num_layers, H)),
        ln1w=1.0 + u(ks[7], (num_layers, H)),
        ln1b=u(ks[8], (num_layers, H)),
        w1=u(ks[9], (num_layers, H, 4 * H)),
        b1=u(ks[10], (num_layers, 4 * H)),
        w2=u(ks[11], (num_layers, 4 * H, H)),
        b2=u(ks[12], (num_layers, H)),
        ln2w=1.0 + u(ks[13], (num_layers, H)),
        ln2b=u(ks[14], (num_layers, H)),
        wout=u(ks[15], (H, output_dim)),
        bout=u(ks[16], (1, output_dim)),
    )


# -------------------- pure-JAX reference (for correctness) ----------------
def reference_forward(x, params, *, nhead, num_layers):
    H = params["wemb"].shape[1]
    hd = H // nhead

    def ln(t, w, b):
        mu = t.mean(-1, keepdims=True)
        var = ((t - mu) ** 2).mean(-1, keepdims=True)
        return (t - mu) * jax.lax.rsqrt(var + LN_EPS) * w + b

    h = x @ params["wemb"] + params["bemb"] + params["pos"][None]
    B, S, _ = h.shape
    for l in range(num_layers):
        qkv = h @ params["wqkv"][l] + params["bqkv"][l]
        q, k, v = jnp.split(qkv, 3, axis=-1)
        sh = lambda t: t.reshape(B, S, nhead, hd).transpose(0, 2, 1, 3)
        qh, kh, vh = sh(q), sh(k), sh(v)
        s = jnp.einsum("bhqd,bhkd->bhqk", qh, kh) / (hd ** 0.5)
        p = jax.nn.softmax(s, axis=-1)
        a = jnp.einsum("bhqk,bhkd->bhqd", p, vh).transpose(0, 2, 1, 3).reshape(B, S, H)
        a = a @ params["wo"][l] + params["bo"][l]
        h = ln(h + a, params["ln1w"][l], params["ln1b"][l])
        ff = jax.nn.relu(h @ params["w1"][l] + params["b1"][l])
        ff = ff @ params["w2"][l] + params["b2"][l]
        h = ln(h + ff, params["ln2w"][l], params["ln2b"][l])
    pooled = h.mean(axis=1)
    return pooled @ params["wout"] + params["bout"]


if __name__ == "__main__":
    batch = 2
    input_dim = 16
    nhead = 4
    hidden_dim = 32
    num_layers = 2
    output_dim = 8

    key = jax.random.PRNGKey(0)
    kx, kp = jax.random.split(key)
    x = jax.random.normal(kx, (batch, SEQUENCE_LENGTH, input_dim), jnp.float32)
    params = init_params(kp, input_dim, nhead, hidden_dim, num_layers, output_dim)

    fwd = jax.jit(functools.partial(transformer_feature_extractor,
                                    nhead=nhead, num_layers=num_layers))
    out = jax.block_until_ready(fwd(x, params))

    ref = reference_forward(x, params, nhead=nhead, num_layers=num_layers)
    assert out.shape == (batch, output_dim)
    # tolerance 2e-3: softmax denominator uses the EUP approximate reciprocal
    assert jnp.allclose(out, ref, atol=2e-3, rtol=2e-3), (out, ref)
    print("KERNEL_OK")
</pallas_src>

<mosaic_0001>
module attributes {stable_mosaic.version = 11 : i64} {
  func.func @encoder_kernel(%arg0: i32, %arg1: i32, %arg2: memref<1x7x16xf32, #tpu.memory_space<vmem>>, %arg3: memref<16x32xf32, #tpu.memory_space<vmem>>, %arg4: memref<1x32xf32, #tpu.memory_space<vmem>>, %arg5: memref<7x32xf32, #tpu.memory_space<vmem>>, %arg6: memref<1x4x32x8xf32, #tpu.memory_space<vmem>>, %arg7: memref<1x4x1x8xf32, #tpu.memory_space<vmem>>, %arg8: memref<1x4x32x8xf32, #tpu.memory_space<vmem>>, %arg9: memref<1x4x1x8xf32, #tpu.memory_space<vmem>>, %arg10: memref<1x4x32x8xf32, #tpu.memory_space<vmem>>, %arg11: memref<1x4x1x8xf32, #tpu.memory_space<vmem>>, %arg12: memref<1x4x8x32xf32, #tpu.memory_space<vmem>>, %arg13: memref<1x1x32xf32, #tpu.memory_space<vmem>>, %arg14: memref<1x1x32xf32, #tpu.memory_space<vmem>>, %arg15: memref<1x1x32xf32, #tpu.memory_space<vmem>>, %arg16: memref<1x32x128xf32, #tpu.memory_space<vmem>>, %arg17: memref<1x1x128xf32, #tpu.memory_space<vmem>>, %arg18: memref<1x128x32xf32, #tpu.memory_space<vmem>>, %arg19: memref<1x1x32xf32, #tpu.memory_space<vmem>>, %arg20: memref<1x1x32xf32, #tpu.memory_space<vmem>>, %arg21: memref<1x1x32xf32, #tpu.memory_space<vmem>>, %arg22: memref<32x128xf32, #tpu.memory_space<vmem>>, %arg23: memref<1x128xf32, #tpu.memory_space<vmem>>, %arg24: memref<1x1x128xf32, #tpu.memory_space<vmem>>, %arg25: memref<7x32xf32, #tpu.memory_space<vmem>>) attributes {dimension_semantics = [#tpu.dimension_semantics<parallel>, #tpu.dimension_semantics<arbitrary>], iteration_bounds = array<i64: 2, 2>, scalar_prefetch = 0 : i64, scratch_operands = 1 : i64, tpu.core_type = #tpu.core_type<tc>, window_params = [{transform_indices = @transform_0, window_bounds = array<i64: 1, 7, 16>}, {pipeline_mode = #tpu.pipeline_mode<synchronous>, transform_indices = @transform_1, window_bounds = array<i64: 16, 32>}, {pipeline_mode = #tpu.pipeline_mode<synchronous>, transform_indices = @transform_2, window_bounds = array<i64: 1, 32>}, {pipeline_mode = #tpu.pipeline_mode<synchronous>, transform_indices = @transform_3, window_bounds = array<i64: 7, 32>}, {transform_indices = @transform_4, window_bounds = array<i64: 1, 4, 32, 8>}, {transform_indices = @transform_5, window_bounds = array<i64: 1, 4, 1, 8>}, {transform_indices = @transform_6, window_bounds = array<i64: 1, 4, 32, 8>}, {transform_indices = @transform_7, window_bounds = array<i64: 1, 4, 1, 8>}, {transform_indices = @transform_8, window_bounds = array<i64: 1, 4, 32, 8>}, {transform_indices = @transform_9, window_bounds = array<i64: 1, 4, 1, 8>}, {transform_indices = @transform_10, window_bounds = array<i64: 1, 4, 8, 32>}, {transform_indices = @transform_11, window_bounds = array<i64: 1, 1, 32>}, {transform_indices = @transform_12, window_bounds = array<i64: 1, 1, 32>}, {transform_indices = @transform_13, window_bounds = array<i64: 1, 1, 32>}, {transform_indices = @transform_14, window_bounds = array<i64: 1, 32, 128>}, {transform_indices = @transform_15, window_bounds = array<i64: 1, 1, 128>}, {transform_indices = @transform_16, window_bounds = array<i64: 1, 128, 32>}, {transform_indices = @transform_17, window_bounds = array<i64: 1, 1, 32>}, {transform_indices = @transform_18, window_bounds = array<i64: 1, 1, 32>}, {transform_indices = @transform_19, window_bounds = array<i64: 1, 1, 32>}, {pipeline_mode = #tpu.pipeline_mode<synchronous>, transform_indices = @transform_20, window_bounds = array<i64: 32, 128>}, {pipeline_mode = #tpu.pipeline_mode<synchronous>, transform_indices = @transform_21, window_bounds = array<i64: 1, 128>}, {transform_indices = @transform_22, window_bounds = array<i64: 1, 1, 128>}]} {
    %c0_i32 = arith.constant 0 : i32
    %0 = arith.cmpi eq, %arg1, %c0_i32 : i32
    %1 = arith.extui %0 : i1 to i32
    %c0_i32_0 = arith.constant 0 : i32
    %2 = arith.cmpi ne, %1, %c0_i32_0 : i32
    scf.if %2 {
      %c0_81 = arith.constant 0 : index
      %c0_82 = arith.constant 0 : index
      %c0_83 = arith.constant 0 : index
      %118 = vector.load %arg2[%c0_81, %c0_82, %c0_83] : memref<1x7x16xf32, #tpu.memory_space<vmem>>, vector<1x7x16xf32>
      %119 = vector.shape_cast %118 : vector<1x7x16xf32> to vector<7x16xf32>
      %c0_84 = arith.constant 0 : index
      %c0_85 = arith.constant 0 : index
      %120 = vector.load %arg3[%c0_84, %c0_85] : memref<16x32xf32, #tpu.memory_space<vmem>>, vector<16x32xf32>
      %cst_86 = arith.constant dense<0.000000e+00> : vector<7x32xf32>
      %121 = tpu.matmul %119, %120, %cst_86 {dimension_numbers = #tpu.dot_dimension_numbers<[1], [0], [0], [1], [0, 0, 1, 1], [], []>} : vector<7x16xf32>, vector<16x32xf32>, vector<7x32xf32> -> vector<7x32xf32>
      %c0_87 = arith.constant 0 : index
      %c0_88 = arith.constant 0 : index
      %122 = vector.load %arg4[%c0_87, %c0_88] : memref<1x32xf32, #tpu.memory_space<vmem>>, vector<1x32xf32>
      %123 = vector.broadcast %122 : vector<1x32xf32> to vector<7x32xf32>
      %124 = arith.addf %121, %123 : vector<7x32xf32>
      %c0_89 = arith.constant 0 : index
      %c0_90 = arith.constant 0 : index
      %125 = vector.load %arg5[%c0_89, %c0_90] : memref<7x32xf32, #tpu.memory_space<vmem>>, vector<7x32xf32>
      %126 = arith.addf %124, %125 : vector<7x32xf32>
      %c0_91 = arith.constant 0 : index
      %c0_92 = arith.constant 0 : index
      %127 = vector.load %arg25[%c0_91, %c0_92] : memref<7x32xf32, #tpu.memory_space<vmem>>, vector<7x32xf32>
      tpu.vector_store %arg25[%c0_91, %c0_92], %126 {strides = array<i32>} : memref<7x32xf32, #tpu.memory_space<vmem>>, vector<7x32xf32>,
    } else {
    }
    %c0 = arith.constant 0 : index
    %c0_1 = arith.constant 0 : index
    %3 = vector.load %arg25[%c0, %c0_1] : memref<7x32xf32, #tpu.memory_space<vmem>>, vector<7x32xf32>
    %4 = vector.shape_cast %3 : vector<7x32xf32> to vector<1x7x32xf32>
    %5 = vector.shape_cast %4 : vector<1x7x32xf32> to vector<1x7x32xf32>
    %6 = vector.broadcast %5 : vector<1x7x32xf32> to vector<4x7x32xf32>
    %c0_2 = arith.constant 0 : index
    %c0_3 = arith.constant 0 : index
    %c0_4 = arith.constant 0 : index
    %c0_5 = arith.constant 0 : index
    %7 = vector.load %arg6[%c0_2, %c0_3, %c0_4, %c0_5] : memref<1x4x32x8xf32, #tpu.memory_space<vmem>>, vector<1x4x32x8xf32>
    %8 = vector.shape_cast %7 : vector<1x4x32x8xf32> to vector<4x32x8xf32>
    "tpu.trace_start"() <{level = 10 : i32, message = "nsh,nhd->nsd"}> : () -> ()
    %cst = arith.constant dense<0.000000e+00> : vector<4x7x8xf32>
    %9 = tpu.matmul %6, %8, %cst {dimension_numbers = #tpu.dot_dimension_numbers<[2], [1], [1], [2], [0, 0, 0, 1, 1, 2], [0], [0]>} : vector<4x7x32xf32>, vector<4x32x8xf32>, vector<4x7x8xf32> -> vector<4x7x8xf32>
    "tpu.trace_stop"() : () -> ()
    %c0_6 = arith.constant 0 : index
    %c0_7 = arith.constant 0 : index
    %c0_8 = arith.constant 0 : index
    %c0_9 = arith.constant 0 : index
    %10 = vector.load %arg7[%c0_6, %c0_7, %c0_8, %c0_9] : memref<1x4x1x8xf32, #tpu.memory_space<vmem>>, vector<1x4x1x8xf32>
    %11 = vector.shape_cast %10 : vector<1x4x1x8xf32> to vector<4x1x8xf32>
    %12 = vector.broadcast %11 : vector<4x1x8xf32> to vector<4x7x8xf32>
    %13 = arith.addf %9, %12 : vector<4x7x8xf32>
    %c0_10 = arith.constant 0 : index
    %c0_11 = arith.constant 0 : index
    %c0_12 = arith.constant 0 : index
    %c0_13 = arith.constant 0 : index
    %14 = vector.load %arg8[%c0_10, %c0_11, %c0_12, %c0_13] : memref<1x4x32x8xf32, #tpu.memory_space<vmem>>, vector<1x4x32x8xf32>
    %15 = vector.shape_cast %14 : vector<1x4x32x8xf32> to vector<4x32x8xf32>
    "tpu.trace_start"() <{level = 10 : i32, message = "nsh,nhd->nsd"}> : () -> ()
    %cst_14 = arith.constant dense<0.000000e+00> : vector<4x7x8xf32>
    %16 = tpu.matmul %6, %15, %cst_14 {dimension_numbers = #tpu.dot_dimension_numbers<[2], [1], [1], [2], [0, 0, 0, 1, 1, 2], [0], [0]>} : vector<4x7x32xf32>, vector<4x32x8xf32>, vector<4x7x8xf32> -> vector<4x7x8xf32>
    "tpu.trace_stop"() : () -> ()
    %c0_15 = arith.constant 0 : index
    %c0_16 = arith.constant 0 : index
    %c0_17 = arith.constant 0 : index
    %c0_18 = arith.constant 0 : index
    %17 = vector.load %arg9[%c0_15, %c0_16, %c0_17, %c0_18] : memref<1x4x1x8xf32, #tpu.memory_space<vmem>>, vector<1x4x1x8xf32>
    %18 = vector.shape_cast %17 : vector<1x4x1x8xf32> to vector<4x1x8xf32>
    %19 = vector.broadcast %18 : vector<4x1x8xf32> to vector<4x7x8xf32>
    %20 = arith.addf %16, %19 : vector<4x7x8xf32>
    %c0_19 = arith.constant 0 : index
    %c0_20 = arith.constant 0 : index
    %c0_21 = arith.constant 0 : index
    %c0_22 = arith.constant 0 : index
    %21 = vector.load %arg10[%c0_19, %c0_20, %c0_21, %c0_22] : memref<1x4x32x8xf32, #tpu.memory_space<vmem>>, vector<1x4x32x8xf32>
    %22 = vector.shape_cast %21 : vector<1x4x32x8xf32> to vector<4x32x8xf32>
    "tpu.trace_start"() <{level = 10 : i32, message = "nsh,nhd->nsd"}> : () -> ()
    %cst_23 = arith.constant dense<0.000000e+00> : vector<4x7x8xf32>
    %23 = tpu.matmul %6, %22, %cst_23 {dimension_numbers = #tpu.dot_dimension_numbers<[2], [1], [1], [2], [0, 0, 0, 1, 1, 2], [0], [0]>} : vector<4x7x32xf32>, vector<4x32x8xf32>, vector<4x7x8xf32> -> vector<4x7x8xf32>
    "tpu.trace_stop"() : () -> ()
    %c0_24 = arith.constant 0 : index
    %c0_25 = arith.constant 0 : index
    %c0_26 = arith.constant 0 : index
    %c0_27 = arith.constant 0 : index
    %24 = vector.load %arg11[%c0_24, %c0_25, %c0_26, %c0_27] : memref<1x4x1x8xf32, #tpu.memory_space<vmem>>, vector<1x4x1x8xf32>
    %25 = vector.shape_cast %24 : vector<1x4x1x8xf32> to vector<4x1x8xf32>
    %26 = vector.broadcast %25 : vector<4x1x8xf32> to vector<4x7x8xf32>
    %27 = arith.addf %23, %26 : vector<4x7x8xf32>
    "tpu.trace_start"() <{level = 10 : i32, message = "nqd,nkd->nqk"}> : () -> ()
    %cst_28 = arith.constant dense<0.000000e+00> : vector<4x7x7xf32>
    %28 = tpu.matmul %13, %20, %cst_28 {dimension_numbers = #tpu.dot_dimension_numbers<[2], [2], [1], [1], [0, 0, 0, 1, 1, 1], [0], [0]>} : vector<4x7x8xf32>, vector<4x7x8xf32>, vector<4x7x7xf32> -> vector<4x7x7xf32>
    "tpu.trace_stop"() : () -> ()
    %cst_29 = arith.constant dense<0xFF800000> : vector<4x7xf32>
    %29 = vector.multi_reduction <maximumf>, %28, %cst_29 [2] : vector<4x7x7xf32> to vector<4x7xf32>
    %30 = vector.shape_cast %29 : vector<4x7xf32> to vector<4x7x1xf32>
    %31 = vector.broadcast %30 : vector<4x7x1xf32> to vector<4x7x7xf32>
    %32 = arith.subf %28, %31 : vector<4x7x7xf32>
    %33 = math.exp %32 : vector<4x7x7xf32>
    %cst_30 = arith.constant dense<0.000000e+00> : vector<4x7xf32>
    %34 = vector.multi_reduction <add>, %33, %cst_30 [2] : vector<4x7x7xf32> to vector<4x7xf32>
    %35 = vector.shape_cast %34 : vector<4x7xf32> to vector<4x7x1xf32>
    %36 = tpu.reciprocal %35 {approx = true} : vector<4x7x1xf32> -> vector<4x7x1xf32>
    %37 = vector.broadcast %36 : vector<4x7x1xf32> to vector<4x7x7xf32>
    %38 = arith.mulf %33, %37 : vector<4x7x7xf32>
    "tpu.trace_start"() <{level = 10 : i32, message = "nqk,nkd->nqd"}> : () -> ()
    %cst_31 = arith.constant dense<0.000000e+00> : vector<4x7x8xf32>
    %39 = tpu.matmul %38, %27, %cst_31 {dimension_numbers = #tpu.dot_dimension_numbers<[2], [1], [1], [2], [0, 0, 0, 1, 1, 2], [0], [0]>} : vector<4x7x7xf32>, vector<4x7x8xf32>, vector<4x7x8xf32> -> vector<4x7x8xf32>
    "tpu.trace_stop"() : () -> ()
    %c0_32 = arith.constant 0 : index
    %c0_33 = arith.constant 0 : index
    %c0_34 = arith.constant 0 : index
    %c0_35 = arith.constant 0 : index
    %40 = vector.load %arg12[%c0_32, %c0_33, %c0_34, %c0_35] : memref<1x4x8x32xf32, #tpu.memory_space<vmem>>, vector<1x4x8x32xf32>
    %41 = vector.shape_cast %40 : vector<1x4x8x32xf32> to vector<4x8x32xf32>
    "tpu.trace_start"() <{level = 10 : i32, message = "nqd,ndh->nqh"}> : () -> ()
    %cst_36 = arith.constant dense<0.000000e+00> : vector<4x7x32xf32>
    %42 = tpu.matmul %39, %41, %cst_36 {dimension_numbers = #tpu.dot_dimension_numbers<[2], [1], [1], [2], [0, 0, 0, 1, 1, 2], [0], [0]>} : vector<4x7x8xf32>, vector<4x8x32xf32>, vector<4x7x32xf32> -> vector<4x7x32xf32>
    "tpu.trace_stop"() : () -> ()
    %cst_37 = arith.constant dense<0.000000e+00> : vector<7x32xf32>
    %43 = vector.multi_reduction <add>, %42, %cst_37 [0] : vector<4x7x32xf32> to vector<7x32xf32>
    %c0_38 = arith.constant 0 : index
    %c0_39 = arith.constant 0 : index
    %c0_40 = arith.constant 0 : index
    %44 = vector.load %arg13[%c0_38, %c0_39, %c0_40] : memref<1x1x32xf32, #tpu.memory_space<vmem>>, vector<1x1x32xf32>
    %45 = vector.shape_cast %44 : vector<1x1x32xf32> to vector<1x32xf32>
    %46 = vector.broadcast %45 : vector<1x32xf32> to vector<7x32xf32>
    %47 = arith.addf %43, %46 : vector<7x32xf32>
    %48 = arith.addf %3, %47 : vector<7x32xf32>
    %c0_41 = arith.constant 0 : index
    %c0_42 = arith.constant 0 : index
    %c0_43 = arith.constant 0 : index
    %49 = vector.load %arg14[%c0_41, %c0_42, %c0_43] : memref<1x1x32xf32, #tpu.memory_space<vmem>>, vector<1x1x32xf32>
    %50 = vector.shape_cast %49 : vector<1x1x32xf32> to vector<1x32xf32>
    %c0_44 = arith.constant 0 : index
    %c0_45 = arith.constant 0 : index
    %c0_46 = arith.constant 0 : index
    %51 = vector.load %arg15[%c0_44, %c0_45, %c0_46] : memref<1x1x32xf32, #tpu.memory_space<vmem>>, vector<1x1x32xf32>
    %52 = vector.shape_cast %51 : vector<1x1x32xf32> to vector<1x32xf32>
    %cst_47 = arith.constant dense<0.000000e+00> : vector<7xf32>
    %53 = vector.multi_reduction <add>, %48, %cst_47 [1] : vector<7x32xf32> to vector<7xf32>
    %54 = vector.shape_cast %53 : vector<7xf32> to vector<7x1xf32>
    %cst_48 = arith.constant 3.200000e+01 : f32
    %55 = vector.broadcast %cst_48 : f32 to vector<7x1xf32>
    %56 = arith.divf %54, %55 : vector<7x1xf32>
    %57 = vector.broadcast %56 : vector<7x1xf32> to vector<7x32xf32>
    %58 = arith.subf %48, %57 : vector<7x32xf32>
    %59 = arith.mulf %58, %58 : vector<7x32xf32>
    %cst_49 = arith.constant dense<0.000000e+00> : vector<7xf32>
    %60 = vector.multi_reduction <add>, %59, %cst_49 [1] : vector<7x32xf32> to vector<7xf32>
    %61 = vector.shape_cast %60 : vector<7xf32> to vector<7x1xf32>
    %cst_50 = arith.constant 3.200000e+01 : f32
    %62 = vector.broadcast %cst_50 : f32 to vector<7x1xf32>
    %63 = arith.divf %61, %62 : vector<7x1xf32>
    %cst_51 = arith.constant 9.99999974E-6 : f32
    %64 = vector.broadcast %cst_51 : f32 to vector<7x1xf32>
    %65 = arith.addf %63, %64 : vector<7x1xf32>
    %66 = math.rsqrt %65 : vector<7x1xf32>
    %67 = vector.broadcast %66 : vector<7x1xf32> to vector<7x32xf32>
    %68 = arith.mulf %58, %67 : vector<7x32xf32>
    %69 = vector.broadcast %50 : vector<1x32xf32> to vector<7x32xf32>
    %70 = arith.mulf %68, %69 : vector<7x32xf32>
    %71 = vector.broadcast %52 : vector<1x32xf32> to vector<7x32xf32>
    %72 = arith.addf %70, %71 : vector<7x32xf32>
    %c0_52 = arith.constant 0 : index
    %c0_53 = arith.constant 0 : index
    %c0_54 = arith.constant 0 : index
    %73 = vector.load %arg16[%c0_52, %c0_53, %c0_54] : memref<1x32x128xf32, #tpu.memory_space<vmem>>, vector<1x32x128xf32>
    %74 = vector.shape_cast %73 : vector<1x32x128xf32> to vector<32x128xf32>
    %cst_55 = arith.constant dense<0.000000e+00> : vector<7x128xf32>
    %75 = tpu.matmul %72, %74, %cst_55 {dimension_numbers = #tpu.dot_dimension_numbers<[1], [0], [0], [1], [0, 0, 1, 1], [], []>} : vector<7x32xf32>, vector<32x128xf32>, vector<7x128xf32> -> vector<7x128xf32>
    %c0_56 = arith.constant 0 : index
    %c0_57 = arith.constant 0 : index
    %c0_58 = arith.constant 0 : index
    %76 = vector.load %arg17[%c0_56, %c0_57, %c0_58] : memref<1x1x128xf32, #tpu.memory_space<vmem>>, vector<1x1x128xf32>
    %77 = vector.shape_cast %76 : vector<1x1x128xf32> to vector<1x128xf32>
    %78 = vector.broadcast %77 : vector<1x128xf32> to vector<7x128xf32>
    %79 = arith.addf %75, %78 : vector<7x128xf32>
    %cst_59 = arith.constant 0.000000e+00 : f32
    %80 = vector.broadcast %cst_59 : f32 to vector<7x128xf32>
    %81 = arith.maximumf %79, %80 : vector<7x128xf32>
    %c0_60 = arith.constant 0 : index
    %c0_61 = arith.constant 0 : index
    %c0_62 = arith.constant 0 : index
    %82 = vector.load %arg18[%c0_60, %c0_61, %c0_62] : memref<1x128x32xf32, #tpu.memory_space<vmem>>, vector<1x128x32xf32>
    %83 = vector.shape_cast %82 : vector<1x128x32xf32> to vector<128x32xf32>
    %cst_63 = arith.constant dense<0.000000e+00> : vector<7x32xf32>
    %84 = tpu.matmul %81, %83, %cst_63 {dimension_numbers = #tpu.dot_dimension_numbers<[1], [0], [0], [1], [0, 0, 1, 1], [], []>} : vector<7x128xf32>, vector<128x32xf32>, vector<7x32xf32> -> vector<7x32xf32>
    %c0_64 = arith.constant 0 : index
    %c0_65 = arith.constant 0 : index
    %c0_66 = arith.constant 0 : index
    %85 = vector.load %arg19[%c0_64, %c0_65, %c0_66] : memref<1x1x32xf32, #tpu.memory_space<vmem>>, vector<1x1x32xf32>
    %86 = vector.shape_cast %85 : vector<1x1x32xf32> to vector<1x32xf32>
    %87 = vector.broadcast %86 : vector<1x32xf32> to vector<7x32xf32>
    %88 = arith.addf %84, %87 : vector<7x32xf32>
    %89 = arith.addf %72, %88 : vector<7x32xf32>
    %c0_67 = arith.constant 0 : index
    %c0_68 = arith.constant 0 : index
    %c0_69 = arith.constant 0 : index
    %90 = vector.load %arg20[%c0_67, %c0_68, %c0_69] : memref<1x1x32xf32, #tpu.memory_space<vmem>>, vector<1x1x32xf32>
    %91 = vector.shape_cast %90 : vector<1x1x32xf32> to vector<1x32xf32>
    %c0_70 = arith.constant 0 : index
    %c0_71 = arith.constant 0 : index
    %c0_72 = arith.constant 0 : index
    %92 = vector.load %arg21[%c0_70, %c0_71, %c0_72] : memref<1x1x32xf32, #tpu.memory_space<vmem>>, vector<1x1x32xf32>
    %93 = vector.shape_cast %92 : vector<1x1x32xf32> to vector<1x32xf32>
    %cst_73 = arith.constant dense<0.000000e+00> : vector<7xf32>
    %94 = vector.multi_reduction <add>, %89, %cst_73 [1] : vector<7x32xf32> to vector<7xf32>
    %95 = vector.shape_cast %94 : vector<7xf32> to vector<7x1xf32>
    %cst_74 = arith.constant 3.200000e+01 : f32
    %96 = vector.broadcast %cst_74 : f32 to vector<7x1xf32>
    %97 = arith.divf %95, %96 : vector<7x1xf32>
    %98 = vector.broadcast %97 : vector<7x1xf32> to vector<7x32xf32>
    %99 = arith.subf %89, %98 : vector<7x32xf32>
    %100 = arith.mulf %99, %99 : vector<7x32xf32>
    %cst_75 = arith.constant dense<0.000000e+00> : vector<7xf32>
    %101 = vector.multi_reduction <add>, %100, %cst_75 [1] : vector<7x32xf32> to vector<7xf32>
    %102 = vector.shape_cast %101 : vector<7xf32> to vector<7x1xf32>
    %cst_76 = arith.constant 3.200000e+01 : f32
    %103 = vector.broadcast %cst_76 : f32 to vector<7x1xf32>
    %104 = arith.divf %102, %103 : vector<7x1xf32>
    %cst_77 = arith.constant 9.99999974E-6 : f32
    %105 = vector.broadcast %cst_77 : f32 to vector<7x1xf32>
    %106 = arith.addf %104, %105 : vector<7x1xf32>
    %107 = math.rsqrt %106 : vector<7x1xf32>
    %108 = vector.broadcast %107 : vector<7x1xf32> to vector<7x32xf32>
    %109 = arith.mulf %99, %108 : vector<7x32xf32>
    %110 = vector.broadcast %91 : vector<1x32xf32> to vector<7x32xf32>
    %111 = arith.mulf %109, %110 : vector<7x32xf32>
    %112 = vector.broadcast %93 : vector<1x32xf32> to vector<7x32xf32>
    %113 = arith.addf %111, %112 : vector<7x32xf32>
    %c0_78 = arith.constant 0 : index
    %c0_79 = arith.constant 0 : index
    %114 = vector.load %arg25[%c0_78, %c0_79] : memref<7x32xf32, #tpu.memory_space<vmem>>, vector<7x32xf32>
    tpu.vector_store %arg25[%c0_78, %c0_79], %113 {strides = array<i32>} : memref<7x32xf32, #tpu.memory_space<vmem>>, vector<7x32xf32>,
    %c1_i32 = arith.constant 1 : i32
    %115 = arith.cmpi eq, %arg1, %c1_i32 : i32
    %116 = arith.extui %115 : i1 to i32
    %c0_i32_80 = arith.constant 0 : i32
    %117 = arith.cmpi ne, %116, %c0_i32_80 : i32
    scf.if %117 {
      %cst_81 = arith.constant 0.142857149 : f32
      %118 = vector.broadcast %cst_81 : f32 to vector<1x7xf32>
      %cst_82 = arith.constant dense<0.000000e+00> : vector<1x32xf32>
      %119 = tpu.matmul %118, %113, %cst_82 {dimension_numbers = #tpu.dot_dimension_numbers<[1], [0], [0], [1], [0, 0, 1, 1], [], []>} : vector<1x7xf32>, vector<7x32xf32>, vector<1x32xf32> -> vector<1x32xf32>
      %c0_83 = arith.constant 0 : index
      %c0_84 = arith.constant 0 : index
      %120 = vector.load %arg22[%c0_83, %c0_84] : memref<32x128xf32, #tpu.memory_space<vmem>>, vector<32x128xf32>
      %cst_85 = arith.constant dense<0.000000e+00> : vector<1x128xf32>
      %121 = tpu.matmul %119, %120, %cst_85 {dimension_numbers = #tpu.dot_dimension_numbers<[1], [0], [0], [1], [0, 0, 1, 1], [], []>} : vector<1x32xf32>, vector<32x128xf32>, vector<1x128xf32> -> vector<1x128xf32>
      %c0_86 = arith.constant 0 : index
      %c0_87 = arith.constant 0 : index
      %122 = vector.load %arg23[%c0_86, %c0_87] : memref<1x128xf32, #tpu.memory_space<vmem>>, vector<1x128xf32>
      %123 = arith.addf %121, %122 : vector<1x128xf32>
      %c0_88 = arith.constant 0 : index
      %c0_89 = arith.constant 0 : index
      %c0_90 = arith.constant 0 : index
      %124 = vector.load %arg24[%c0_88, %c0_89, %c0_90] : memref<1x1x128xf32, #tpu.memory_space<vmem>>, vector<1x1x128xf32>
      %125 = vector.shape_cast %124 : vector<1x1x128xf32> to vector<1x128xf32>
      %126 = vector.shape_cast %123 : vector<1x128xf32> to vector<1x1x128xf32>
      tpu.vector_store %arg24[%c0_88, %c0_89, %c0_90], %126 {strides = array<i32>} : memref<1x1x128xf32, #tpu.memory_space<vmem>>, vector<1x1x128xf32>,
    } else {
    }
    return
  }
  func.func @transform_0(%arg0: i32, %arg1: i32) -> (i32, i32, i32) {
    %c0_i32 = arith.constant 0 : i32
    %c0_i32_0 = arith.constant 0 : i32
    %c0_i32_1 = arith.constant 0 : i32
    return %arg0, %c0_i32, %c0_i32_0 : i32, i32, i32
  }
  func.func @transform_1(%arg0: i32, %arg1: i32) -> (i32, i32) {
    %c0_i32 = arith.constant 0 : i32
    %c0_i32_0 = arith.constant 0 : i32
    %c0_i32_1 = arith.constant 0 : i32
    return %c0_i32, %c0_i32_0 : i32, i32
  }
  func.func @transform_2(%arg0: i32, %arg1: i32) -> (i32, i32) {
    %c0_i32 = arith.constant 0 : i32
    %c0_i32_0 = arith.constant 0 : i32
    %c0_i32_1 = arith.constant 0 : i32
    return %c0_i32, %c0_i32_0 : i32, i32
  }
  func.func @transform_3(%arg0: i32, %arg1: i32) -> (i32, i32) {
    %c0_i32 = arith.constant 0 : i32
    %c0_i32_0 = arith.constant 0 : i32
    %c0_i32_1 = arith.constant 0 : i32
    return %c0_i32, %c0_i32_0 : i32, i32
  }
  func.func @transform_4(%arg0: i32, %arg1: i32) -> (i32, i32, i32, i32) {
    %c0_i32 = arith.constant 0 : i32
    %c0_i32_0 = arith.constant 0 : i32
    %c0_i32_1 = arith.constant 0 : i32
    %c0_i32_2 = arith.constant 0 : i32
    return %arg1, %c0_i32, %c0_i32_0, %c0_i32_1 : i32, i32, i32, i32
  }
  func.func @transform_5(%arg0: i32, %arg1: i32) -> (i32, i32, i32, i32) {
    %c0_i32 = arith.constant 0 : i32
    %c0_i32_0 = arith.constant 0 : i32
    %c0_i32_1 = arith.constant 0 : i32
    %c0_i32_2 = arith.constant 0 : i32
    return %arg1, %c0_i32, %c0_i32_0, %c0_i32_1 : i32, i32, i32, i32
  }
  func.func @transform_6(%arg0: i32, %arg1: i32) -> (i32, i32, i32, i32) {
    %c0_i32 = arith.constant 0 : i32
    %c0_i32_0 = arith.constant 0 : i32
    %c0_i32_1 = arith.constant 0 : i32
    %c0_i32_2 = arith.constant 0 : i32
    return %arg1, %c0_i32, %c0_i32_0, %c0_i32_1 : i32, i32, i32, i32
  }
  func.func @transform_7(%arg0: i32, %arg1: i32) -> (i32, i32, i32, i32) {
    %c0_i32 = arith.constant 0 : i32
    %c0_i32_0 = arith.constant 0 : i32
    %c0_i32_1 = arith.constant 0 : i32
    %c0_i32_2 = arith.constant 0 : i32
    return %arg1, %c0_i32, %c0_i32_0, %c0_i32_1 : i32, i32, i32, i32
  }
  func.func @transform_8(%arg0: i32, %arg1: i32) -> (i32, i32, i32, i32) {
    %c0_i32 = arith.constant 0 : i32
    %c0_i32_0 = arith.constant 0 : i32
    %c0_i32_1 = arith.constant 0 : i32
    %c0_i32_2 = arith.constant 0 : i32
    return %arg1, %c0_i32, %c0_i32_0, %c0_i32_1 : i32, i32, i32, i32
  }
  func.func @transform_9(%arg0: i32, %arg1: i32) -> (i32, i32, i32, i32) {
    %c0_i32 = arith.constant 0 : i32
    %c0_i32_0 = arith.constant 0 : i32
    %c0_i32_1 = arith.constant 0 : i32
    %c0_i32_2 = arith.constant 0 : i32
    return %arg1, %c0_i32, %c0_i32_0, %c0_i32_1 : i32, i32, i32, i32
  }
  func.func @transform_10(%arg0: i32, %arg1: i32) -> (i32, i32, i32, i32) {
    %c0_i32 = arith.constant 0 : i32
    %c0_i32_0 = arith.constant 0 : i32
    %c0_i32_1 = arith.constant 0 : i32
    %c0_i32_2 = arith.constant 0 : i32
    return %arg1, %c0_i32, %c0_i32_0, %c0_i32_1 : i32, i32, i32, i32
  }
  func.func @transform_11(%arg0: i32, %arg1: i32) -> (i32, i32, i32) {
    %c0_i32 = arith.constant 0 : i32
    %c0_i32_0 = arith.constant 0 : i32
    %c0_i32_1 = arith.constant 0 : i32
    return %arg1, %c0_i32, %c0_i32_0 : i32, i32, i32
  }
  func.func @transform_12(%arg0: i32, %arg1: i32) -> (i32, i32, i32) {
    %c0_i32 = arith.constant 0 : i32
    %c0_i32_0 = arith.constant 0 : i32
    %c0_i32_1 = arith.constant 0 : i32
    return %arg1, %c0_i32, %c0_i32_0 : i32, i32, i32
  }
  func.func @transform_13(%arg0: i32, %arg1: i32) -> (i32, i32, i32) {
    %c0_i32 = arith.constant 0 : i32
    %c0_i32_0 = arith.constant 0 : i32
    %c0_i32_1 = arith.constant 0 : i32
    return %arg1, %c0_i32, %c0_i32_0 : i32, i32, i32
  }
  func.func @transform_14(%arg0: i32, %arg1: i32) -> (i32, i32, i32) {
    %c0_i32 = arith.constant 0 : i32
    %c0_i32_0 = arith.constant 0 : i32
    %c0_i32_1 = arith.constant 0 : i32
    return %arg1, %c0_i32, %c0_i32_0 : i32, i32, i32
  }
  func.func @transform_15(%arg0: i32, %arg1: i32) -> (i32, i32, i32) {
    %c0_i32 = arith.constant 0 : i32
    %c0_i32_0 = arith.constant 0 : i32
    %c0_i32_1 = arith.constant 0 : i32
    return %arg1, %c0_i32, %c0_i32_0 : i32, i32, i32
  }
  func.func @transform_16(%arg0: i32, %arg1: i32) -> (i32, i32, i32) {
    %c0_i32 = arith.constant 0 : i32
    %c0_i32_0 = arith.constant 0 : i32
    %c0_i32_1 = arith.constant 0 : i32
    return %arg1, %c0_i32, %c0_i32_0 : i32, i32, i32
  }
  func.func @transform_17(%arg0: i32, %arg1: i32) -> (i32, i32, i32) {
    %c0_i32 = arith.constant 0 : i32
    %c0_i32_0 = arith.constant 0 : i32
    %c0_i32_1 = arith.constant 0 : i32
    return %arg1, %c0_i32, %c0_i32_0 : i32, i32, i32
  }
  func.func @transform_18(%arg0: i32, %arg1: i32) -> (i32, i32, i32) {
    %c0_i32 = arith.constant 0 : i32
    %c0_i32_0 = arith.constant 0 : i32
    %c0_i32_1 = arith.constant 0 : i32
    return %arg1, %c0_i32, %c0_i32_0 : i32, i32, i32
  }
  func.func @transform_19(%arg0: i32, %arg1: i32) -> (i32, i32, i32) {
    %c0_i32 = arith.constant 0 : i32
    %c0_i32_0 = arith.constant 0 : i32
    %c0_i32_1 = arith.constant 0 : i32
    return %arg1, %c0_i32, %c0_i32_0 : i32, i32, i32
  }
  func.func @transform_20(%arg0: i32, %arg1: i32) -> (i32, i32) {
    %c0_i32 = arith.constant 0 : i32
    %c0_i32_0 = arith.constant 0 : i32
    %c0_i32_1 = arith.constant 0 : i32
    return %c0_i32, %c0_i32_0 : i32, i32
  }
  func.func @transform_21(%arg0: i32, %arg1: i32) -> (i32, i32) {
    %c0_i32 = arith.constant 0 : i32
    %c0_i32_0 = arith.constant 0 : i32
    %c0_i32_1 = arith.constant 0 : i32
    return %c0_i32, %c0_i32_0 : i32, i32
  }
  func.func @transform_22(%arg0: i32, %arg1: i32) -> (i32, i32, i32) {
    %c0_i32 = arith.constant 0 : i32
    %c0_i32_0 = arith.constant 0 : i32
    %c0_i32_1 = arith.constant 0 : i32
    return %arg0, %c0_i32, %c0_i32_0 : i32, i32, i32
  }
}

</mosaic_0001>

<bundles_post_ra>
// kernel: transformer_feature_extractor.1
= control target key start
LH: loop header
LB: loop body
LE: loop exit
PB: predicated region body
PF: predicated region fallthrough
CT: control target
= control target key end

     0   :  { %s4984_s0 = inlined_call_operand.vmem [shape: f32[2,7,16], index: 0, kind: input, shape index: {}]   ;;  %s4985_s1 = inlined_call_operand.vmem [shape: f32[16,32], index: 1, kind: input, shape index: {}]   ;;  %s4986_s2 = inlined_call_operand.vmem [shape: f32[1,32], index: 2, kind: input, shape index: {}]   ;;  %s4987_s3 = inlined_call_operand.vmem [shape: f32[7,32], index: 3, kind: input, shape index: {}]   ;;  %s4988_s4 = inlined_call_operand.vmem [shape: f32[2,4,32,8], index: 4, kind: input, shape index: {}]   ;;  %s4989_s5 = inlined_call_operand.vmem [shape: f32[2,4,1,8], index: 5, kind: input, shape index: {}]   ;;  %s4990_s6 = inlined_call_operand.vmem [shape: f32[2,4,32,8], index: 6, kind: input, shape index: {}]   ;;  %s4991_s7 = inlined_call_operand.vmem [shape: f32[2,4,1,8], index: 7, kind: input, shape index: {}]   ;;  %s4992_s8 = inlined_call_operand.vmem [shape: f32[2,4,32,8], index: 8, kind: input, shape index: {}]   ;;  %s4993_s9 = inlined_call_operand.vmem [shape: f32[2,4,1,8], index: 9, kind: input, shape index: {}]   ;;  %s4994_s10 = inlined_call_operand.vmem [shape: f32[2,4,8,32], index: 10, kind: input, shape index: {}]   ;;  %s4995_s11 = inlined_call_operand.vmem [shape: f32[2,1,32], index: 11, kind: input, shape index: {}]   ;;  %s4996_s12 = inlined_call_operand.vmem [shape: f32[2,1,32], index: 12, kind: input, shape index: {}]   ;;  %s4997_s13 = inlined_call_operand.vmem [shape: f32[2,1,32], index: 13, kind: input, shape index: {}]   ;;  %s4998_s14 = inlined_call_operand.vmem [shape: f32[2,32,128], index: 14, kind: input, shape index: {}]   ;;  %s4999_s15 = inlined_call_operand.vmem [shape: f32[2,1,128], index: 15, kind: input, shape index: {}]   ;;  %s5000_s16 = inlined_call_operand.vmem [shape: f32[2,128,32], index: 16, kind: input, shape index: {}]   ;;  %s5001_s17 = inlined_call_operand.vmem [shape: f32[2,1,32], index: 17, kind: input, shape index: {}]   ;;  %s5002_s18 = inlined_call_operand.vmem [shape: f32[2,1,32], index: 18, kind: input, shape index: {}]   ;;  %s5003_s19 = inlined_call_operand.vmem [shape: f32[2,1,32], index: 19, kind: input, shape index: {}]   ;;  %s5004_s20 = inlined_call_operand.vmem [shape: f32[32,128], index: 20, kind: input, shape index: {}]   ;;  %s5005_s21 = inlined_call_operand.vmem [shape: f32[1,128], index: 21, kind: input, shape index: {}]   ;;  %s5006_s22 = inlined_call_operand.hbm [shape: f32[2,1,128], index: 22, kind: output, shape index: {}]  }
   0x1   :  { %5027 = sst [smem:[#allocation23_spill]] %s4984_s0 }
   0x2   :  { %5028 = sst [smem:[#allocation24_spill]] %s4985_s1 }
   0x3   :  { %5029 = sst [smem:[#allocation25_spill]] %s4986_s2 }
   0x4   :  { %5030 = sst [smem:[#allocation26_spill]] %s4987_s3 }
   0x5   :  { %5031 = sst [smem:[#allocation27_spill]] %s4988_s4 }
   0x6   :  { %5032 = sst [smem:[#allocation28_spill]] %s4989_s5 }
   0x7   :  { %5033 = sst [smem:[#allocation29_spill]] %s4990_s6 }
   0x8   :  { %5034 = sst [smem:[#allocation30_spill]] %s4991_s7 }
   0x9   :  { %5035 = sst [smem:[#allocation31_spill]] %s4992_s8 }
   0xa   :  { %5036 = sst [smem:[#allocation32_spill]] %s4993_s9 }
   0xb   :  { %5037 = sst [smem:[#allocation33_spill]] %s4994_s10 }
   0xc   :  { %5038 = sst [smem:[#allocation34_spill]] %s4998_s14 }
   0xd   :  { %5039 = sst [smem:[#allocation35_spill]] %s5003_s19 }
   0xe   :  { %5040 = sst [smem:[#allocation36_spill]] %s5004_s20 }
   0xf   :  { %5041 = sst [smem:[#allocation37_spill]] %s5005_s21 }
  0x10   :  { %5042 = sst [smem:[#allocation38_spill]] %s5006_s22 }
  0x11   :  { %27 = vsyncpa [#allocation4], 0 }
  0x12   :  { %29 = vsyncpa [#allocation4 + $0x1], 0  ;;  %s4426_s3 = smov 0   ;;  %s4428_s28 = smov 0  }
  0x13   :  { %s4430_s29 = smov 0   ;;  %s4432_s30 = smov 0  }
  0x14   :  { %s4434_s4 = smov 0   ;;  %s4436_s0 = smov 0  }
  0x15   :  { %s4438_s23 = smov 0   ;;  %s4440_s1 = smov 0  }
  0x16 LB: > { %5043 = sst [smem:[#allocation6_spill]] %s4273_s3  ;;  %s3645_s5 = sadd.s32 4294967295, %s4301_s1   ;;  %s4301_s1 = sphi %s4440_s1, %s35_s1   ;;  %s4297_s23 = sphi %s4438_s23, %s5106_s23   ;;  %s4293_s0 = sphi %s4436_s0, %s5102_s0   ;;  %s4289_s4 = sphi %s4434_s4, %s5101_s4   ;;  %s4285_s30 = sphi %s4432_s30, %s5100_s30   ;;  %s4281_s29 = sphi %s4430_s29, %s5099_s29   ;;  %s4277_s28 = sphi %s4428_s28, %s5105_s28   ;;  %s4273_s3 = sphi %s4426_s3, %s5104_s3  }
  0x17   : > { %5044 = sst [smem:[#allocation7_spill]] %s4281_s29  ;;  %s3646_s24 = sadd.s32 4294967294, %s4301_s1  }
  0x18   : > { %5045 = sst [smem:[#allocation8_spill]] %s4285_s30  ;;  %s44_s6 = sadd.s32 1, %s4293_s0 }
  0x19   : > { %5046 = sst [smem:[#allocation9_spill]] %s4289_s4  ;;  %p45_p0 = scmp.ge.s32.totalorder %s44_s6, 2 }
  0x1a   : > { %5047 = sst [smem:[#allocation10_spill]] %s4293_s0  ;;  %s47_s25 = sadd.s32 1, %s4297_s23 }
  0x1b   : > { %5048 = sst [smem:[#allocation11_spill]] %s4297_s23  ;;  %p611_p1 = scmp.ne.s32.totalorder %s4281_s29, %s4277_s28 }
  0x1c   : > { %5049 = sst [smem:[#allocation12_spill]] %s4301_s1  ;;  %p612_p2 = scmp.eq.s32.totalorder %s3645_s5, 3 }
  0x1d   : > { %s5108_s6 = smov (%p45_p0, %s44_s6), 0  ;;  %s5110_s25 = smov (!%p45_p0, %s47_s25), %s4297_s23 }
  0x1e   : > { %5050 = sst [smem:[#allocation13_spill]] %s5108_s6  ;;  %p4475_p3 = por %p612_p2, %p611_p1 }
  0x1f   : > { %p617_p4 = scmp.ne.s32.totalorder %s4277_s28, %s4273_s3  ;;  %p49_p5 = scmp.ge.s32.totalorder %s5110_s25, 2 }
  0x20   : > { %s5051_s26 = scalar_select %p4475_p3, 1, 0 }
  0x21   : > { %p618_p6 = scmp.eq.s32.totalorder %s3646_s24, 3  ;;  %p3649_p7 = scmp.ge.s32.totalorder %s4301_s1, 1 }
  0x22   : > { %5052 = sst [smem:[#allocation14_spill]] %s5051_s26  ;;  %p769_p8 = scmp.lt.s32.totalorder %s4301_s1, 5 }
  0x23   : > { %s5112_s25 = smov (%p49_p5, %s5110_s25), 0  ;;  %p4485_p9 = por %p618_p6, %p617_p4 }
  0x24   : > { %5053 = sst [smem:[#allocation15_spill]] %s5112_s25  ;;  %p770_p10 = pnand %p3649_p7, %p769_p8 }
  0x25   : > { %s5054_s2 = scalar_select %p4485_p9, 1, 0 }
  0x26   : > { %s598_s27 = ssub.s32 %s4297_s23, %s5112_s25  ;;  %s601_s5 = sadd.s32 1, %s4281_s29 }
  0x27   : > { %5055 = sst [smem:[#allocation16_spill]] %s5054_s2  ;;  %p599_p11 = scmp.eq.s32.totalorder %s598_s27, 0 }
  0x28   : > { %773 = sbr.rel (%p770_p10) target bundleno = 2861 (0xb2d), region = 108 }
  0x29   : > { %s4493_s6 = scalar_select %p599_p11, %s4281_s29, %s601_s5  }
  0x2b   : > { %5056 = sst [smem:[#allocation17_spill]] %s4493_s6 }
  0x2d   : > { %p892_p12 = scmp.lt.s32.totalorder %s4289_s4, 1  ;;  %p896_p13 = scmp.lt.s32.totalorder %s4285_s30, 1 }
  0x2e   : > { %s5057_s23 = sld [smem:[#allocation23_spill]] }
  0x2f   : > { %s893_s0 = scalar_select %p892_p12, %s4289_s4, 1 }
  0x30   : > { %s4500_s3 = scalar_select %p896_p13, %s4285_s30, 1 }
  0x31   : > { %s3650_s27 = sshll.u32 %s893_s0, 3  ;;  %s5058_s1 = sld [smem:[#allocation27_spill]] }
  0x32   : > { %s3728_s29 = sshll.u32 %s4500_s3, 7  ;;  %s3653_s26 = sshll.u32 %s4500_s3, 2 }
  0x33   : > { %s5060_s20 = sld [smem:[#allocation28_spill]]  ;;  %s955_s21 = scalar_lea.vmem %s5002_s18, %s4500_s3 }
  0x34   : > { %s895_s6 = scalar_lea.vmem %s5057_s23, %s3650_s27  ;;  %s5062_s25 = sld [smem:[#allocation29_spill]] }
  0x35   : > { %s5064_s7 = sld [smem:[#allocation30_spill]]  ;;  %s4567_s27 = scalar_lea.vmem %s5000_s16, %s3728_s29 }
  0x36   : > { %s5066_s8 = sld [smem:[#allocation31_spill]] }
  0x37   : > { %s4509_s22 = scalar_lea.vmem %s5058_s1, %s3728_s29  ;;  %s5067_s9 = sld [smem:[#allocation32_spill]] }
  0x38   : > { %5059 = sst [smem:[#allocation18_spill]] %s4509_s22  ;;  %s952_s1 = scalar_lea.vmem %s5001_s17, %s4500_s3 }
  0x39   : > { %s4515_s30 = scalar_lea.vmem %s5060_s20, %s3653_s26  ;;  %s5068_s10 = sld [smem:[#allocation33_spill]] }
  0x3a   : > { %5061 = sst [smem:[#allocation19_spill]] %s4515_s30  ;;  %s4520_s23 = scalar_lea.vmem %s5062_s25, %s3728_s29 }
  0x3b   : > { %5063 = sst [smem:[#allocation20_spill]] %s4520_s23  ;;  %s4525_s2 = scalar_lea.vmem %s5064_s7, %s3653_s26 }
  0x3c   : > { %5065 = sst [smem:[#allocation21_spill]] %s4525_s2  ;;  %s4530_s22 = scalar_lea.vmem %s5066_s8, %s3728_s29 }
  0x3d   : > { %s4535_s20 = scalar_lea.vmem %s5067_s9, %s3653_s26  ;;  %s3731_s30 = sshll.u32 %s4500_s3, 5 }
  0x3e   : > { %s5070_s14 = sld [smem:[#allocation34_spill]] }
  0x3f   : > { %s4541_s25 = scalar_lea.vmem %s5068_s10, %s3731_s30  ;;  %s5071_s4 = sld [smem:[#allocation35_spill]] }
  0x40   : > { %5069 = sst [smem:[#allocation22_spill]] %s4541_s25 }
  0x41   : > { %s5073_s0 = sld [smem:[#allocation8_spill]] }
  0x44   : > { %s4558_s9 = scalar_lea.vmem %s5070_s14, %s3731_s30  ;;  %s5072_s14 = sand.u32 1, %s4277_s28  }
  0x45   : > { %s958_s5 = scalar_lea.vmem %s5071_s4, %s4500_s3  ;;  %s4583_s19 = scalar_lea.vmem [#allocation3], %s5072_s14 }
  0x47   : > { %p3666_p0 = scmp.ne.s32.totalorder %s5073_s0, 0 }
  0x48   : > { %s5074_s23 = sld [smem:[#allocation24_spill]] (!%p3666_p0) }
  0x49   : > { %962 = sbr.rel (%p3666_p0) target bundleno = 281 (0x119), region = 112  ;;  %s5076_s24 = sld [smem:[#allocation25_spill]] (!%p3666_p0) }
  0x4a   : > { %s5077_s4 = sld [smem:[#allocation26_spill]] (!%p3666_p0) }
  0x4e   : > { %s5075_s10 = smov %s5074_s23  ;;  %v965_v0 = vld [vmem:[%s5074_s23 + $0x8] sm:$0xff]  ;;  %v4303_v1 = vmov 0.0   ;;  %vm4304_vm0 = vmmov 0   ;;  %v963_v3 = vld [vmem:[%s895_s6] sm:$0x7f]  ;;  %vm973_vm1 = vcmask 130048  }
  0x4f   : > { %3850 = vmatprep.subr.mxu0 %v4303_v1  ;;  %v964_v2 = vld [vmem:[%s5075_s10] sm:$0xff]  ;;  %3854 = vmatprep.mubr.msk.f32.mxu0 %vm4304_vm0, %v4303_v1  ;;  %vm1049_vm2 = vcmask 260096  }
  0x50   : > { %3851 = vmatpush3.msra.mxu0 %v965_v0  ;;  %v3667_v4 = vld [vmem:[%s5076_s24] ss:$0 sm:$0xff] }
  0x51   : > { %3852 = vmatprep.subr.mxu0 %v4303_v1  ;;  %v1047_v6 = vld [vmem:[%s5077_s4] sm:$0x7f] }
  0x52   : > { %3853 = vmatpush3.msra.mxu0 %v964_v2 }
  0x53   : > { %3855 = vmatmul.mubr.msk.f32.vlgmr.msra.gmra.mxu0 %vm973_vm1, %v963_v3 }
 0x113   : > { %v1043_v5 = vpop.f32.mrf.mxu0 }
 0x114   : > { %v1044_v7 = vadd.f32 %v3667_v4, %v1043_v5 }
 0x115   : > { %v3856_v8 = vpop.f32.mrf.mxu0 }
 0x116   : > { %v1048_v9 = vadd.f32 %v1047_v6, %v1044_v7 }
 0x118   : > { %1050 = vst.msk [vmem:[#allocation2] sm:$0x7f] %vm1049_vm2, %v1048_v9 }
 0x119 PF: > { %s5078_s6 = sld [smem:[#allocation18_spill]]  ;;  %v4305_v12 = vmov 0.0   ;;  %vm1096_vm3 = vcmask 261120   ;;  %vm4306_vm4 = vmmov 0   ;;  %v1711_v44 = vld [vmem:[%s4530_s22 + $0x38] sm:$0xff]  ;;  %v1710_v45 = vld [vmem:[%s4530_s22 + $0x30] sm:$0xff]  ;;  %s5083_s7 = scalar_lea.vmem %s4995_s11, %s4500_s3 }
 0x11a   : > { %3857 = vmatprep.subr.mxu0 %v4305_v12  ;;  %3890 = vmatprep.subr.mxu1 %v4305_v12  ;;  %s5079_s0 = sld [smem:[#allocation20_spill]]  ;;  %v1709_v46 = vld [vmem:[%s4530_s22 + $0x28] sm:$0xff]  ;;  %v1708_v47 = vld [vmem:[%s4530_s22 + $0x20] sm:$0xff]  ;;  %v1707_v48 = vld [vmem:[%s4530_s22 + $0x18] sm:$0xff]  ;;  %vm2028_vm5 = vcmask 64512   ;;  %vm2382_vm6 = vcmask 1046528   ;;  %s5084_s14 = scalar_lea.vmem %s4996_s12, %s4500_s3 }
 0x11b   : > { %3865 = vmatprep.mubr.msk.f32.mxu0 %vm4306_vm4, %v4305_v12  ;;  %3898 = vmatprep.mubr.msk.f32.mxu1 %vm4306_vm4, %v4305_v12  ;;  %v1719_v49 = vld [vmem:[%s4530_s22 + $0x78] sm:$0xff]  ;;  %v1706_v50 = vld [vmem:[%s4530_s22 + $0x10] sm:$0xff]  ;;  %v1705_v52 = vld [vmem:[%s4530_s22 + $0x8] sm:$0xff]  ;;  %s5080_s29 = sld [smem:[#allocation21_spill]]  ;;  %vm2333_vm7 = vcmask 55296   ;;  %vm2378_vm8 = vcmask 56320   ;;  %s5085_s26 = scalar_lea.vmem %s4997_s13, %s4500_s3 }
 0x11c   : > { %v1718_v51 = vld [vmem:[%s4530_s22 + $0x70] sm:$0xff]  ;;  %v1717_v53 = vld [vmem:[%s4530_s22 + $0x68] sm:$0xff]  ;;  %v1704_v54 = vld [vmem:[%s4530_s22] sm:$0xff]  ;;  %s5081_s25 = sld [smem:[#allocation19_spill]]  ;;  %vm2980_vm9 = vcmask 260096  }
 0x11d   : > { %v1716_v55 = vld [vmem:[%s4530_s22 + $0x60] sm:$0xff]  ;;  %v1715_v56 = vld [vmem:[%s4530_s22 + $0x58] sm:$0xff]  ;;  %v1714_v57 = vld [vmem:[%s4530_s22 + $0x50] sm:$0xff]  ;;  %s5088_s23 = sld [smem:[#allocation8_spill]] }
 0x11e   : > { %v1713_v58 = vld [vmem:[%s4530_s22 + $0x48] sm:$0xff]  ;;  %v1712_v59 = vld [vmem:[%s4530_s22 + $0x40] sm:$0xff]  ;;  %s5082_s22 = sld [smem:[#allocation22_spill]] }
 0x11f   : > { %v1055_v10 = vld [vmem:[%s5078_s6 + $0x18] sm:$0xff]  ;;  %v1054_v13 = vld [vmem:[%s5078_s6 + $0x10] sm:$0xff]  ;;  %v1053_v15 = vld [vmem:[%s5078_s6 + $0x8] sm:$0xff] }
 0x120   : > { %v1067_v11 = vld [vmem:[%s5078_s6 + $0x78] sm:$0xff]  ;;  %v1066_v14 = vld [vmem:[%s5078_s6 + $0x70] sm:$0xff]  ;;  %3858 = vmatpush3.msra.mxu0 %v1055_v10  ;;  %v1065_v16 = vld [vmem:[%s5078_s6 + $0x68] sm:$0xff] }
 0x121   : > { %3891 = vmatpush3.msra.mxu1 %v1067_v11  ;;  %3859 = vmatprep.subr.mxu0 %v4305_v12  ;;  %v1052_v17 = vld [vmem:[%s5078_s6] sm:$0xff]  ;;  %v1059_v20 = vld [vmem:[%s5078_s6 + $0x38] sm:$0xff]  ;;  %v1058_v22 = vld [vmem:[%s5078_s6 + $0x30] sm:$0xff] }
 0x122   : > { %3892 = vmatprep.subr.mxu1 %v4305_v12  ;;  %3860 = vmatpush3.msra.mxu0 %v1054_v13  ;;  %v1064_v18 = vld [vmem:[%s5078_s6 + $0x60] sm:$0xff]  ;;  %v1387_v21 = vld [vmem:[%s5079_s0 + $0x38] sm:$0xff]  ;;  %v1386_v23 = vld [vmem:[%s5079_s0 + $0x30] sm:$0xff] }
 0x123   : > { %3893 = vmatpush3.msra.mxu1 %v1066_v14  ;;  %3861 = vmatprep.subr.mxu0 %v4305_v12  ;;  %v4612_v19 = vld [vmem:[#allocation2] sm:$0x7f]  ;;  %v1057_v24 = vld [vmem:[%s5078_s6 + $0x28] sm:$0xff]  ;;  %v1063_v28 = vld [vmem:[%s5078_s6 + $0x58] sm:$0xff]  ;;  %p3721_p1 = scmp.ne.s32.totalorder %s5088_s23, 1 }
 0x124   : > { %3894 = vmatprep.subr.mxu1 %v4305_v12  ;;  %3862 = vmatpush3.msra.mxu0 %v1053_v15  ;;  %v1385_v25 = vld [vmem:[%s5079_s0 + $0x28] sm:$0xff]  ;;  %v1056_v26 = vld [vmem:[%s5078_s6 + $0x20] sm:$0xff]  ;;  %v1395_v29 = vld [vmem:[%s5079_s0 + $0x78] sm:$0xff]  ;;  %s5089_s2 = sld [smem:[#allocation36_spill]] (!%p3721_p1) }
 0x125   : > { %3895 = vmatpush3.msra.mxu1 %v1065_v16  ;;  %3863 = vmatprep.subr.mxu0 %v4305_v12  ;;  %v1384_v27 = vld [vmem:[%s5079_s0 + $0x20] sm:$0xff]  ;;  %v1062_v30 = vld [vmem:[%s5078_s6 + $0x50] sm:$0xff]  ;;  %v1061_v32 = vld [vmem:[%s5078_s6 + $0x48] sm:$0xff]  ;;  %s5090_s4 = sld [smem:[#allocation37_spill]] (!%p3721_p1) }
 0x126   : > { %3896 = vmatprep.subr.mxu1 %v4305_v12  ;;  %3864 = vmatpush3.msra.mxu0 %v1052_v17  ;;  %v1394_v31 = vld [vmem:[%s5079_s0 + $0x70] sm:$0xff]  ;;  %v1393_v33 = vld [vmem:[%s5079_s0 + $0x68] sm:$0xff]  ;;  %v1060_v34 = vld [vmem:[%s5078_s6 + $0x40] sm:$0xff]  ;;  %s5086_s6 = scalar_lea.vmem %s4999_s15, %s4500_s3 }
 0x127   : > { %3897 = vmatpush3.msra.mxu1 %v1064_v18  ;;  %3866 = vmatmul.mubr.msk.f32.vlgmr.msra.gmra.mxu0 %vm1096_vm3, %v4612_v19  ;;  %v1392_v35 = vld [vmem:[%s5079_s0 + $0x60] sm:$0xff]  ;;  %v1383_v36 = vld [vmem:[%s5079_s0 + $0x18] sm:$0xff]  ;;  %v1382_v37 = vld [vmem:[%s5079_s0 + $0x10] sm:$0xff] }
 0x128   : > { %3868 = vmatprep.subr.mxu0 %v4305_v12  ;;  %3912 = vmatprep.subr.mxu1 %v4305_v12  ;;  %v1381_v38 = vld [vmem:[%s5079_s0 + $0x8] sm:$0xff]  ;;  %v1380_v39 = vld [vmem:[%s5079_s0] sm:$0xff]  ;;  %v1391_v40 = vld [vmem:[%s5079_s0 + $0x58] sm:$0xff] }
 0x129   : > { %3869 = vmatpush3.msra.mxu0 %v1059_v20  ;;  %3899 = vmatmul.mubr.msk.f32.vlgmr.msra.gmra.mxu1 %vm1096_vm3, %v4612_v19  ;;  %v1390_v41 = vld [vmem:[%s5079_s0 + $0x50] sm:$0xff]  ;;  %v1389_v42 = vld [vmem:[%s5079_s0 + $0x48] sm:$0xff]  ;;  %v1388_v43 = vld [vmem:[%s5079_s0 + $0x40] sm:$0xff] }
 0x12a   : > { %3870 = vmatprep.subr.mxu0 %v4305_v12  ;;  %3913 = vmatpush3.msra.mxu1 %v1387_v21  ;;  %v3680_v4 = vld [vmem:[%s5080_s29 + $0x3] ss:$0 sm:$0xff]  ;;  %v3677_v13 = vld [vmem:[%s5080_s29] ss:$0 sm:$0xff]  ;;  %v3678_v14 = vld [vmem:[%s5080_s29 + $0x1] ss:$0 sm:$0xff] }
 0x12b   : > { %3871 = vmatpush3.msra.mxu0 %v1058_v22  ;;  %3914 = vmatprep.subr.mxu1 %v4305_v12  ;;  %v3672_v5 = vld [vmem:[%s5081_s25 + $0x3] ss:$0 sm:$0xff]  ;;  %v3669_v16 = vld [vmem:[%s5081_s25] ss:$0 sm:$0xff]  ;;  %v3670_v22 = vld [vmem:[%s5081_s25 + $0x1] ss:$0 sm:$0xff] }
 0x12c   : > { %3872 = vmatprep.subr.mxu0 %v4305_v12  ;;  %3915 = vmatpush3.msra.mxu1 %v1386_v23  ;;  %v3679_v23 = vld [vmem:[%s5080_s29 + $0x2] ss:$0 sm:$0xff] }
 0x12d   : > { %3873 = vmatpush3.msra.mxu0 %v1057_v24  ;;  %3916 = vmatprep.subr.mxu1 %v4305_v12 }
 0x12e   : > { %3874 = vmatprep.subr.mxu0 %v4305_v12  ;;  %3917 = vmatpush3.msra.mxu1 %v1385_v25 }
 0x12f   : > { %3875 = vmatpush3.msra.mxu0 %v1056_v26  ;;  %3918 = vmatprep.subr.mxu1 %v4305_v12  ;;  %v3671_v26 = vld [vmem:[%s5081_s25 + $0x2] ss:$0 sm:$0xff] }
 0x130   : > { %3876 = vmatprep.mubr.msk.f32.mxu0 %vm4306_vm4, %v4305_v12  ;;  %3919 = vmatpush3.msra.mxu1 %v1384_v27 }
 0x131   : > { %3877 = vmatmul.mubr.msk.f32.vlgmr.msra.gmra.mxu0 %vm1096_vm3, %v4612_v19  ;;  %3879 = vmatprep.subr.mxu0 %v4305_v12 }
 0x132   : > { %3920 = vmatprep.mubr.msk.f32.mxu1 %vm4306_vm4, %v4305_v12  ;;  %3934 = vmatprep.subr.mxu1 %v4305_v12 }
 0x133   : > { %3880 = vmatpush3.msra.mxu0 %v1063_v28  ;;  %3921 = vmatmul.mubr.msk.f32.vlgmr.msra.gmra.mxu1 %vm1096_vm3, %v4612_v19 }
 0x134   : > { %3881 = vmatprep.subr.mxu0 %v4305_v12  ;;  %3935 = vmatpush3.msra.mxu1 %v1395_v29 }
 0x135   : > { %3882 = vmatpush3.msra.mxu0 %v1062_v30  ;;  %3936 = vmatprep.subr.mxu1 %v4305_v12 }
 0x136   : > { %3883 = vmatprep.subr.mxu0 %v4305_v12  ;;  %3937 = vmatpush3.msra.mxu1 %v1394_v31 }
 0x137   : > { %3884 = vmatpush3.msra.mxu0 %v1061_v32  ;;  %3938 = vmatprep.subr.mxu1 %v4305_v12  ;;  %v3686_v32 = vld [vmem:[%s4535_s20 + $0x1] ss:$0 sm:$0xff] }
 0x138   : > { %3885 = vmatprep.subr.mxu0 %v4305_v12  ;;  %3939 = vmatpush3.msra.mxu1 %v1393_v33  ;;  %v3685_v33 = vld [vmem:[%s4535_s20] ss:$0 sm:$0xff] }
 0x139   : > { %3886 = vmatpush3.msra.mxu0 %v1060_v34  ;;  %3940 = vmatprep.subr.mxu1 %v4305_v12 }
 0x13a   : > { %3887 = vmatprep.mubr.msk.f32.mxu0 %vm4306_vm4, %v4305_v12  ;;  %3941 = vmatpush3.msra.mxu1 %v1392_v35 }
 0x13b   : > { %3942 = vmatprep.mubr.msk.f32.mxu1 %vm4306_vm4, %v4305_v12  ;;  %3888 = vmatmul.mubr.msk.f32.vlgmr.msra.gmra.mxu0 %vm1096_vm3, %v4612_v19 }
 0x13c   : > { %3901 = vmatprep.subr.mxu0 %v4305_v12  ;;  %3943 = vmatmul.mubr.msk.f32.vlgmr.msra.gmra.mxu1 %vm1096_vm3, %v4612_v19 }
 0x13d   : > { %3902 = vmatpush3.msra.mxu0 %v1383_v36  ;;  %3909 = vmatprep.mubr.msk.f32.mxu0 %vm4306_vm4, %v4305_v12 }
 0x13e   : > { %3903 = vmatprep.subr.mxu0 %v4305_v12  ;;  %3956 = vmatprep.subr.mxu1 %v4305_v12 }
 0x13f   : > { %3904 = vmatpush3.msra.mxu0 %v1382_v37  ;;  %3964 = vmatprep.mubr.msk.f32.mxu1 %vm4306_vm4, %v4305_v12 }
 0x140   : > { %3905 = vmatprep.subr.mxu0 %v4305_v12  ;;  %3957 = vmatpush3.msra.mxu1 %v1711_v44 }
 0x141   : > { %3906 = vmatpush3.msra.mxu0 %v1381_v38  ;;  %3958 = vmatprep.subr.mxu1 %v4305_v12 }
 0x142   : > { %3907 = vmatprep.subr.mxu0 %v4305_v12  ;;  %3959 = vmatpush3.msra.mxu1 %v1710_v45 }
 0x143   : > { %3908 = vmatpush3.msra.mxu0 %v1380_v39  ;;  %3960 = vmatprep.subr.mxu1 %v4305_v12 }
 0x144   : > { %3910 = vmatmul.mubr.msk.f32.vlgmr.msra.gmra.mxu0 %vm1096_vm3, %v4612_v19  ;;  %3923 = vmatprep.subr.mxu0 %v4305_v12 }
 0x145   : > { %3924 = vmatpush3.msra.mxu0 %v1391_v40  ;;  %3931 = vmatprep.mubr.msk.f32.mxu0 %vm4306_vm4, %v4305_v12 }
 0x146   : > { %3925 = vmatprep.subr.mxu0 %v4305_v12  ;;  %3961 = vmatpush3.msra.mxu1 %v1709_v46 }
 0x147   : > { %3926 = vmatpush3.msra.mxu0 %v1390_v41  ;;  %3962 = vmatprep.subr.mxu1 %v4305_v12 }
 0x148   : > { %3927 = vmatprep.subr.mxu0 %v4305_v12  ;;  %3963 = vmatpush3.msra.mxu1 %v1708_v47 }
 0x149   : > { %3928 = vmatpush3.msra.mxu0 %v1389_v42  ;;  %3978 = vmatprep.subr.mxu1 %v4305_v12 }
 0x14a   : > { %3929 = vmatprep.subr.mxu0 %v4305_v12  ;;  %3965 = vmatmul.mubr.msk.f32.vlgmr.msra.gmra.mxu1 %vm1096_vm3, %v4612_v19 }
 0x14b   : > { %3930 = vmatpush3.msra.mxu0 %v1388_v43  ;;  %3979 = vmatpush3.msra.mxu1 %v1719_v49 }
 0x14c   : > { %3932 = vmatmul.mubr.msk.f32.vlgmr.msra.gmra.mxu0 %vm1096_vm3, %v4612_v19  ;;  %3945 = vmatprep.subr.mxu0 %v4305_v12 }
 0x14d   : > { %3953 = vmatprep.mubr.msk.f32.mxu0 %vm4306_vm4, %v4305_v12  ;;  %3946 = vmatpush3.msra.mxu0 %v1707_v48 }
 0x14e   : > { %3947 = vmatprep.subr.mxu0 %v4305_v12  ;;  %3980 = vmatprep.subr.mxu1 %v4305_v12 }
 0x14f   : > { %3948 = vmatpush3.msra.mxu0 %v1706_v50  ;;  %3981 = vmatpush3.msra.mxu1 %v1718_v51 }
 0x150   : > { %3949 = vmatprep.subr.mxu0 %v4305_v12  ;;  %3982 = vmatprep.subr.mxu1 %v4305_v12 }
 0x151   : > { %3950 = vmatpush3.msra.mxu0 %v1705_v52  ;;  %3983 = vmatpush3.msra.mxu1 %v1717_v53 }
 0x152   : > { %3951 = vmatprep.subr.mxu0 %v4305_v12  ;;  %3986 = vmatprep.mubr.msk.f32.mxu1 %vm4306_vm4, %v4305_v12 }
 0x153   : > { %3984 = vmatprep.subr.mxu1 %v4305_v12  ;;  %3952 = vmatpush3.msra.mxu0 %v1704_v54 }
 0x154   : > { %3954 = vmatmul.mubr.msk.f32.vlgmr.msra.gmra.mxu0 %vm1096_vm3, %v4612_v19  ;;  %3967 = vmatprep.subr.mxu0 %v4305_v12 }
 0x155   : > { %3985 = vmatpush3.msra.mxu1 %v1716_v55  ;;  %3968 = vmatpush3.msra.mxu0 %v1715_v56 }
 0x156   : > { %3987 = vmatmul.mubr.msk.f32.vlgmr.msra.gmra.mxu1 %vm1096_vm3, %v4612_v19  ;;  %4004 = vmatprep.subr.mxu1 %v4305_v12 }
 0x157   : > { %3969 = vmatprep.subr.mxu0 %v4305_v12  ;;  %4006 = vmatprep.mubr.msk.f32.mxu1 %vm4306_vm4, %v4305_v12 }
 0x158   : > { %3970 = vmatpush3.msra.mxu0 %v1714_v57  ;;  %3975 = vmatprep.mubr.msk.f32.mxu0 %vm4306_vm4, %v4305_v12 }
 0x159   : > { %3971 = vmatprep.subr.mxu0 %v4305_v12 }
 0x15a   : > { %3972 = vmatpush3.msra.mxu0 %v1713_v58 }
 0x15b   : > { %3973 = vmatprep.subr.mxu0 %v4305_v12 }
 0x15c   : > { %3974 = vmatpush3.msra.mxu0 %v1712_v59 }
 0x15d   : > { %3976 = vmatmul.mubr.msk.f32.vlgmr.msra.gmra.mxu0 %vm1096_vm3, %v4612_v19  ;;  %3989 = vmatprep.subr.mxu0 %v4305_v12 }
 0x15e   : > { %3991 = vmatprep.mubr.msk.f32.mxu0 %vm4306_vm4, %v4305_v12 }
 0x1e7   : > { %v1166_v60 = vpop.f32.mrf.mxu0 }
 0x1e8   : > { %v1167_v21 = vadd.f32 %v3669_v16, %v1166_v60 }
 0x1e9   : > { %v3867_v61 = vpop.f32.mrf.mxu0  ;;  %v1376_v62 = vpop.f32.mrf.mxu1 }
 0x1ea   : > { %v1377_v10 = vadd.f32 %v3672_v5, %v1376_v62 }
 0x1eb   : > { %v3900_v63 = vpop.f32.mrf.mxu1 }
 0x1f1   : > { %v1236_v0 = vpop.f32.mrf.mxu0 }
 0x1f2   : > { %v1237_v24 = vadd.f32 %v3670_v22, %v1236_v0 }
 0x1f3   : > { %v3878_v1 = vpop.f32.mrf.mxu0  ;;  %v1560_v2 = vpop.f32.mrf.mxu1 }
 0x1f4   : > { %v1561_v20 = vadd.f32 %v3678_v14, %v1560_v2 }
 0x1f5   : > { %v3922_v3 = vpop.f32.mrf.mxu1 }
 0x1fb   : > { %v1306_v6 = vpop.f32.mrf.mxu0 }
 0x1fc   : > { %v1700_v7 = vpop.f32.mrf.mxu1  ;;  %v1307_v29 = vadd.f32 %v3671_v26, %v1306_v6 }
 0x1fd   : > { %v1701_v8 = vadd.f32 %v3680_v4, %v1700_v7  ;;  %v3889_v9 = vpop.f32.mrf.mxu0 }
 0x1fe   : > { %v3944_v11 = vpop.f32.mrf.mxu1 }
 0x1ff   : > { %4005 = vmatpush3.xpose.msk.msra.mxu1 %vm2028_vm5, %v1701_v8 }
 0x200   : > { %4014 = vmatprep.subr.mxu1 %v4305_v12 }
 0x202   : > { %4007 = vmatmul.mubr.msk.f32.vlgmr.msra.gmra.mxu1 %vm2028_vm5, %v1377_v10 }
 0x203   : > { %4016 = vmatprep.mubr.msk.f32.mxu1 %vm4306_vm4, %v4305_v12 }
 0x204   : > { %v1490_v15 = vpop.f32.mrf.mxu0 }
 0x205   : > { %v1491_v17 = vadd.f32 %v3677_v13, %v1490_v15  ;;  %v3687_v15 = vld [vmem:[%s4535_s20 + $0x2] ss:$0 sm:$0xff] }
 0x206   : > { %v3911_v18 = vpop.f32.mrf.mxu0 }
 0x207   : > { %3990 = vmatpush3.xpose.msk.msra.mxu0 %vm2028_vm5, %v1491_v17 }
 0x208   : > { %3994 = vmatprep.subr.mxu0 %v4305_v12 }
 0x20a   : > { %3992 = vmatmul.mubr.msk.f32.vlgmr.msra.gmra.mxu0 %vm2028_vm5, %v1167_v21  ;;  %v1884_v30 = vpop.f32.mrf.mxu1 }
 0x20b   : > { %3995 = vmatpush3.xpose.msk.msra.mxu0 %vm2028_vm5, %v1561_v20  ;;  %3996 = vmatprep.mubr.msk.f32.mxu0 %vm4306_vm4, %v4305_v12  ;;  %v1885_v35 = vadd.f32 %v3686_v32, %v1884_v30  ;;  %v3688_v20 = vld [vmem:[%s4535_s20 + $0x3] ss:$0 sm:$0xff]  ;;  %v2686_v30 = vld [vmem:[%s5082_s22 + $0x10] sm:$0xff] }
 0x20c   : > { %v1630_v25 = vpop.f32.mrf.mxu0  ;;  %3999 = vmatprep.subr.mxu0 %v4305_v12  ;;  %v3966_v31 = vpop.f32.mrf.mxu1 }
 0x20d   : > { %v1631_v27 = vadd.f32 %v3679_v23, %v1630_v25  ;;  %4015 = vmatpush3.msk.msra.mxu1 %vm2382_vm6, %v1885_v35 }
 0x20e   : > { %v3933_v28 = vpop.f32.mrf.mxu0  ;;  %3997 = vmatmul.mubr.msk.f32.vlgmr.msra.gmra.mxu0 %vm2028_vm5, %v1237_v24  ;;  %4024 = vmatprep.subr.mxu1 %v4305_v12 }
 0x20f   : > { %4000 = vmatpush3.xpose.msk.msra.mxu0 %vm2028_vm5, %v1631_v27  ;;  %4001 = vmatprep.mubr.msk.f32.mxu0 %vm4306_vm4, %v4305_v12  ;;  %v2684_v28 = vld [vmem:[%s5082_s22] sm:$0xff] }
 0x210   : > { %4009 = vmatprep.subr.mxu0 %v4305_v12 }
 0x212   : > { %4002 = vmatmul.mubr.msk.f32.vlgmr.msra.gmra.mxu0 %vm2028_vm5, %v1307_v29  ;;  %v2685_v29 = vld [vmem:[%s5082_s22 + $0x8] sm:$0xff] }
 0x213   : > { %4011 = vmatprep.mubr.msk.f32.mxu0 %vm4306_vm4, %v4305_v12 }
 0x214   : > { %v1814_v34 = vpop.f32.mrf.mxu0 }
 0x215   : > { %v1815_v36 = vadd.f32 %v3685_v33, %v1814_v34  ;;  %v2687_v33 = vld [vmem:[%s5082_s22 + $0x18] sm:$0xff] }
 0x216   : > { %v4780_v37 = vpop.f32.mrf.mxu1  ;;  %v3955_v38 = vpop.f32.mrf.mxu0 }
 0x217   : > { %4010 = vmatpush3.msk.msra.mxu0 %vm2382_vm6, %v1815_v36  ;;  %v2025_v23 = vadd.f32 %v3688_v20, %v4780_v37 }
 0x218   : > { %v3988_v39 = vpop.f32.mrf.mxu1  ;;  %4019 = vmatprep.subr.mxu0 %v4305_v12 }
 0x21d   : > { %v1954_v40 = vpop.f32.mrf.mxu0 }
 0x21e   : > { %v1955_v18 = vadd.f32 %v3687_v15, %v1954_v40  ;;  %v3116_v15 = vld [vmem:[%s4567_s27 + $0x20] sm:$0xff] }
 0x21f   : > { %v3977_v41 = vpop.f32.mrf.mxu0 }
 0x2c2   : > { %v2329_v42 = vpop.f32.mrf.mxu1 }
 0x2c3   : > { %v2343_v53 = vsel %vm2333_vm7, %v2329_v42, -inf }
 0x2c4   : > { %v4008_v43 = vpop.f32.mrf.mxu1 }
 0x2ca   : > { %v2101_v44 = vpop.f32.mrf.mxu0 }
 0x2cb   : > { %v2334_v45 = vsel %vm2333_vm7, %v2101_v44, -inf }
 0x2cc   : > { %2335 = vmax.xlane.f32.xlu0 %v2334_v45  ;;  %v3993_v46 = vpop.f32.mrf.mxu0 }
 0x2ce   : > { %v2177_v47 = vpop.f32.mrf.mxu0 }
 0x2cf   : > { %v2337_v48 = vsel %vm2333_vm7, %v2177_v47, -inf }
 0x2d0   : > { %2338 = vmax.xlane.f32.xlu0 %v2337_v48  ;;  %v3998_v49 = vpop.f32.mrf.mxu0 }
 0x2d2   : > { %v2253_v50 = vpop.f32.mrf.mxu0 }
 0x2d3   : > { %v2340_v51 = vsel %vm2333_vm7, %v2253_v50, -inf }
 0x2d4   : > { %2341 = vmax.xlane.f32.xlu1 %v2340_v51  ;;  %v4003_v52 = vpop.f32.mrf.mxu0 }
 0x2d8   : > { %2344 = vmax.xlane.f32.xlu1 %v2343_v53  ;;  %v3713_v53 = vld [vmem:[%s5083_s7] ss:$0 sm:$0xff] }
 0x355   : > { %v2336_v54 = vpop.xlane.xlu0 %2335 }
 0x356   : > { %v2346_v55 = vsub.f32 %v2101_v44, %v2336_v54 }
 0x358   : > { %v2350_v56 = vmul.f32 1.442695, %v2346_v55 }
 0x359   : > { %v2339_v57 = vpop.xlane.xlu0 %2338 }
 0x35a   : > { %4189 = vpow2.f32 %v2350_v56  ;;  %v2347_v58 = vsub.f32 %v2177_v47, %v2339_v57 }
 0x35c   : > { %v2352_v59 = vmul.f32 1.442695, %v2347_v58 }
 0x35d   : > { %v2342_v60 = vpop.xlane.xlu1 %2341 }
 0x35e   : > { %4191 = vpow2.f32 %v2352_v59  ;;  %v2348_v61 = vsub.f32 %v2253_v50, %v2342_v60 }
 0x360   : > { %v2354_v62 = vmul.f32 1.442695, %v2348_v61 }
 0x361   : > { %v2345_v63 = vpop.xlane.xlu1 %2344 }
 0x362   : > { %4193 = vpow2.f32 %v2354_v62  ;;  %v2349_v0 = vsub.f32 %v2329_v42, %v2345_v63 }
 0x364   : > { %v2356_v1 = vmul.f32 1.442695, %v2349_v0  ;;  %v3030_v0 = vld [vmem:[%s4558_s9 + $0x18] sm:$0xff] }
 0x366   : > { %4195 = vpow2.f32 %v2356_v1  ;;  %v3029_v1 = vld [vmem:[%s4558_s9 + $0x10] sm:$0xff] }
 0x367   : > { %v4190_v2 = vpop.eup %4189 }
 0x368   : > { %v2358_v3 = vsel %vm2333_vm7, %v4190_v2, 0.0 }
 0x369   : > { %2359 = vadd.xlane.f32.xlu0 %v2358_v3  ;;  %v3127_v3 = vld [vmem:[%s4567_s27 + $0x78] sm:$0xff] }
 0x36b   : > { %v4192_v4 = vpop.eup %4191 }
 0x36c   : > { %v2361_v5 = vsel %vm2333_vm7, %v4192_v4, 0.0 }
 0x36d   : > { %2362 = vadd.xlane.f32.xlu1 %v2361_v5  ;;  %v3125_v5 = vld [vmem:[%s4567_s27 + $0x68] sm:$0xff] }
 0x36f   : > { %v4194_v6 = vpop.eup %4193 }
 0x370   : > { %v2364_v7 = vsel %vm2333_vm7, %v4194_v6, 0.0 }
 0x371   : > { %2365 = vadd.xlane.f32.xlu0 %v2364_v7  ;;  %v3123_v7 = vld [vmem:[%s4567_s27 + $0x58] sm:$0xff] }
 0x373   : > { %v4196_v8 = vpop.eup %4195 }
 0x374   : > { %v2367_v9 = vsel %vm2333_vm7, %v4196_v8, 0.0 }
 0x375   : > { %2368 = vadd.xlane.f32.xlu1 %v2367_v9  ;;  %v3121_v9 = vld [vmem:[%s4567_s27 + $0x48] sm:$0xff] }
 0x3f2   : > { %v2360_v10 = vpop.xlane.xlu0 %2359 }
 0x3f3   : > { %4197 = vrcp.f32 %v2360_v10  ;;  %v3120_v10 = vld [vmem:[%s4567_s27 + $0x40] sm:$0xff] }
 0x3f6   : > { %v2363_v11 = vpop.xlane.xlu1 %2362 }
 0x3f7   : > { %4199 = vrcp.f32 %v2363_v11  ;;  %v3119_v11 = vld [vmem:[%s4567_s27 + $0x38] sm:$0xff] }
 0x3fa   : > { %v2366_v13 = vpop.xlane.xlu0 %2365 }
 0x3fb   : > { %4201 = vrcp.f32 %v2366_v13  ;;  %v3118_v13 = vld [vmem:[%s4567_s27 + $0x30] sm:$0xff] }
 0x3fe   : > { %v2369_v14 = vpop.xlane.xlu1 %2368 }
 0x3ff   : > { %4203 = vrcp.f32 %v2369_v14  ;;  %v3117_v14 = vld [vmem:[%s4567_s27 + $0x28] sm:$0xff] }
 0x400   : > { %v4198_v16 = vpop.eup %4197 }
 0x401   : > { %v2374_v17 = vmul.f32 %v4198_v16, %v4190_v2  ;;  %v3027_v2 = vld [vmem:[%s4558_s9] sm:$0xff]  ;;  %v3115_v16 = vld [vmem:[%s4567_s27 + $0x18] sm:$0xff] }
 0x403   : > { %4012 = vmatmul.mubr.msk.f32.vlgmr.msra.gmra.mxu0 %vm2378_vm8, %v2374_v17 }
 0x404   : > { %v4200_v21 = vpop.eup %4199  ;;  %4020 = vmatpush3.msk.msra.mxu0 %vm2382_vm6, %v1955_v18  ;;  %4021 = vmatprep.mubr.msk.f32.mxu0 %vm4306_vm4, %v4305_v12 }
 0x405   : > { %v2375_v22 = vmul.f32 %v4200_v21, %v4192_v4  ;;  %4029 = vmatprep.subr.mxu0 %v4305_v12  ;;  %v3126_v4 = vld [vmem:[%s4567_s27 + $0x70] sm:$0xff] }
 0x407   : > { %4017 = vmatmul.mubr.msk.f32.vlgmr.msra.gmra.mxu1 %vm2378_vm8, %v2375_v22  ;;  %v3714_v22 = vld [vmem:[%s5084_s14] ss:$0 sm:$0xff] }
 0x408   : > { %v4202_v24 = vpop.eup %4201  ;;  %4025 = vmatpush3.msk.msra.mxu1 %vm2382_vm6, %v2025_v23  ;;  %4026 = vmatprep.mubr.msk.f32.mxu1 %vm4306_vm4, %v4305_v12 }
 0x409   : > { %v2376_v25 = vmul.f32 %v4202_v24, %v4194_v6  ;;  %4034 = vmatprep.subr.mxu1 %v4305_v12  ;;  %v3124_v6 = vld [vmem:[%s4567_s27 + $0x60] sm:$0xff] }
 0x40a   : > { %v3715_v24 = vld [vmem:[%s5085_s26] ss:$0 sm:$0xff] }
 0x40b   : > { %4022 = vmatmul.mubr.msk.f32.vlgmr.msra.gmra.mxu0 %vm2378_vm8, %v2376_v25 }
 0x40c   : > { %v4204_v26 = vpop.eup %4203  ;;  %4031 = vmatprep.mubr.msk.f32.mxu0 %vm4306_vm4, %v4305_v12  ;;  %4030 = vmatpush3.msra.mxu0 %v2684_v28  ;;  %v3113_v28 = vld [vmem:[%s4567_s27 + $0x8] sm:$0xff] }
 0x40d   : > { %v2377_v27 = vmul.f32 %v4204_v26, %v4196_v8  ;;  %4039 = vmatprep.subr.mxu0 %v4305_v12  ;;  %v3122_v8 = vld [vmem:[%s4567_s27 + $0x50] sm:$0xff] }
 0x40f   : > { %4027 = vmatmul.mubr.msk.f32.vlgmr.msra.gmra.mxu1 %vm2378_vm8, %v2377_v27  ;;  %v3114_v27 = vld [vmem:[%s4567_s27 + $0x10] sm:$0xff] }
 0x410   : > { %4036 = vmatprep.mubr.msk.f32.mxu1 %vm4306_vm4, %v4305_v12  ;;  %4035 = vmatpush3.msra.mxu1 %v2685_v29  ;;  %v3112_v29 = vld [vmem:[%s4567_s27] sm:$0xff] }
 0x411   : > { %4044 = vmatprep.subr.mxu1 %v4305_v12 }
 0x4c3   : > { %v2452_v31 = vpop.f32.mrf.mxu0 }
 0x4c4   : > { %4032 = vmatmul.mubr.msk.f32.vlgmr.msra.gmra.mxu0 %vm2028_vm5, %v2452_v31 }
 0x4c5   : > { %v4013_v32 = vpop.f32.mrf.mxu0  ;;  %4040 = vmatpush3.msra.mxu0 %v2686_v30  ;;  %4041 = vmatprep.mubr.msk.f32.mxu0 %vm4306_vm4, %v4305_v12  ;;  %v3716_v30 = vld [vmem:[%s5086_s6] ss:$0 sm:$0xff] }
 0x4c6   : > { %4049 = vmatprep.subr.mxu0 %v4305_v12 }
 0x4c7   : > { %v2528_v34 = vpop.f32.mrf.mxu1 }
 0x4c8   : > { %4037 = vmatmul.mubr.msk.f32.vlgmr.msra.gmra.mxu1 %vm2028_vm5, %v2528_v34 }
 0x4c9   : > { %v4018_v35 = vpop.f32.mrf.mxu1  ;;  %4045 = vmatpush3.msra.mxu1 %v2687_v33  ;;  %4046 = vmatprep.mubr.msk.f32.mxu1 %vm4306_vm4, %v4305_v12 }
 0x4ca   : > { %4060 = vmatprep.subr.mxu1 %v4305_v12  ;;  %v3718_v35 = vld [vmem:[%s952_s1] ss:$0 sm:$0xff] }
 0x4cb   : > { %v2604_v36 = vpop.f32.mrf.mxu0 }
 0x4cc   : > { %4042 = vmatmul.mubr.msk.f32.vlgmr.msra.gmra.mxu0 %vm2028_vm5, %v2604_v36 }
 0x4cd   : > { %v4023_v37 = vpop.f32.mrf.mxu0  ;;  %4057 = vmatprep.mubr.msk.f32.mxu0 %vm4306_vm4, %v4305_v12  ;;  %4050 = vmatpush3.msra.mxu0 %v3030_v0 }
 0x4ce   : > { %4051 = vmatprep.subr.mxu0 %v4305_v12 }
 0x4cf   : > { %v2680_v38 = vpop.f32.mrf.mxu1  ;;  %4052 = vmatpush3.msra.mxu0 %v3029_v1 }
 0x4d0   : > { %4047 = vmatmul.mubr.msk.f32.vlgmr.msra.gmra.mxu1 %vm2028_vm5, %v2680_v38  ;;  %4053 = vmatprep.subr.mxu0 %v4305_v12 }
 0x4d1   : > { %v4028_v39 = vpop.f32.mrf.mxu1  ;;  %4092 = vmatprep.mubr.msk.f32.mxu1 %vm4306_vm4, %v4305_v12  ;;  %4061 = vmatpush3.msra.mxu1 %v3127_v3 }
 0x4d2   : > { %4062 = vmatprep.subr.mxu1 %v4305_v12 }
 0x4d3   : > { %4063 = vmatpush3.msra.mxu1 %v3126_v4 }
 0x4d4   : > { %4064 = vmatprep.subr.mxu1 %v4305_v12 }
 0x4d5   : > { %4065 = vmatpush3.msra.mxu1 %v3125_v5 }
 0x4d6   : > { %4066 = vmatprep.subr.mxu1 %v4305_v12 }
 0x4d7   : > { %4067 = vmatpush3.msra.mxu1 %v3124_v6 }
 0x4d8   : > { %4068 = vmatprep.subr.mxu1 %v4305_v12 }
 0x4d9   : > { %4069 = vmatpush3.msra.mxu1 %v3123_v7 }
 0x4da   : > { %4070 = vmatprep.subr.mxu1 %v4305_v12 }
 0x4db   : > { %4071 = vmatpush3.msra.mxu1 %v3122_v8 }
 0x4dc   : > { %4072 = vmatprep.subr.mxu1 %v4305_v12 }
 0x4dd   : > { %4073 = vmatpush3.msra.mxu1 %v3121_v9 }
 0x4de   : > { %4074 = vmatprep.subr.mxu1 %v4305_v12 }
 0x4df   : > { %4075 = vmatpush3.msra.mxu1 %v3120_v10 }
 0x4e0   : > { %4076 = vmatprep.subr.mxu1 %v4305_v12 }
 0x4e1   : > { %4077 = vmatpush3.msra.mxu1 %v3119_v11 }
 0x4e2   : > { %4078 = vmatprep.subr.mxu1 %v4305_v12 }
 0x4e3   : > { %4079 = vmatpush3.msra.mxu1 %v3118_v13 }
 0x4e4   : > { %4080 = vmatprep.subr.mxu1 %v4305_v12 }
 0x4e5   : > { %4081 = vmatpush3.msra.mxu1 %v3117_v14 }
 0x4e6   : > { %4082 = vmatprep.subr.mxu1 %v4305_v12 }
 0x4e7   : > { %4083 = vmatpush3.msra.mxu1 %v3116_v15 }
 0x4e8   : > { %4084 = vmatprep.subr.mxu1 %v4305_v12 }
 0x4e9   : > { %4085 = vmatpush3.msra.mxu1 %v3115_v16 }
 0x4ea   : > { %4086 = vmatprep.subr.mxu1 %v4305_v12 }
 0x4eb   : > { %4087 = vmatpush3.msra.mxu1 %v3114_v27 }
 0x4ec   : > { %4088 = vmatprep.subr.mxu1 %v4305_v12 }
 0x4ed   : > { %4089 = vmatpush3.msra.mxu1 %v3113_v28 }
 0x4ee   : > { %4090 = vmatprep.subr.mxu1 %v4305_v12 }
 0x4ef   : > { %4091 = vmatpush3.msra.mxu1 %v3112_v29 }
 0x584   : > { %v2757_v40 = vpop.f32.mrf.mxu0 }
 0x585   : > { %v2981_v46 = vsel %vm2980_vm9, %v2757_v40, 0.0 }
 0x586   : > { %v4033_v41 = vpop.f32.mrf.mxu0 }
 0x588   : > { %v2830_v42 = vpop.f32.mrf.mxu1 }
 0x589   : > { %v2982_v44 = vsel %vm2980_vm9, %v2830_v42, 0.0 }
 0x58a   : > { %v4038_v43 = vpop.f32.mrf.mxu1  ;;  %v2983_v48 = vadd.f32 %v2982_v44, %v2981_v46 }
 0x58c   : > { %v2903_v45 = vpop.f32.mrf.mxu0 }
 0x58d   : > { %v2984_v47 = vsel %vm2980_vm9, %v2903_v45, 0.0 }
 0x58e   : > { %v4043_v49 = vpop.f32.mrf.mxu0  ;;  %v2985_v50 = vadd.f32 %v2984_v47, %v2983_v48 }
 0x58f   : > { %v3719_v49 = vld [vmem:[%s955_s21] ss:$0 sm:$0xff] }
 0x590   : > { %v2976_v51 = vpop.f32.mrf.mxu1 }
 0x591   : > { %v2986_v52 = vsel %vm2980_vm9, %v2976_v51, 0.0  ;;  %v3720_v51 = vld [vmem:[%s958_s5] ss:$0 sm:$0xff] }
 0x592   : > { %v2987_v54 = vadd.f32 %v2986_v52, %v2985_v50  ;;  %v4048_v55 = vpop.f32.mrf.mxu1 }
 0x594   : > { %v2995_v56 = vadd.f32 %v3713_v53, %v2987_v54 }
 0x596   : > { %v2996_v57 = vadd.f32 %v2995_v56, %v4612_v19  ;;  %v3028_v19 = vld [vmem:[%s4558_s9 + $0x8] sm:$0xff] }
 0x597   : > { %4054 = vmatpush3.msra.mxu0 %v3028_v19 }
 0x598   : > { %v2999_v58 = vsel %vm2980_vm9, %v2996_v57, 0.0  ;;  %4055 = vmatprep.subr.mxu0 %v4305_v12 }
 0x599   : > { %3000 = vadd.xlane.f32.xlu0 %v2999_v58  ;;  %4056 = vmatpush3.msra.mxu0 %v3027_v2 }
 0x622   : > { %v3001_v59 = vpop.xlane.xlu0 %3000 }
 0x623   : > { %v3003_v60 = vmul.f32 0.03125, %v3001_v59 }
 0x625   : > { %v3004_v61 = vsub.f32 %v2996_v57, %v3003_v60 }
 0x627   : > { %v3005_v62 = vmul.f32 %v3004_v61, %v3004_v61 }
 0x629   : > { %v3006_v63 = vsel %vm2980_vm9, %v3005_v62, 0.0 }
 0x62a   : > { %3007 = vadd.xlane.f32.xlu1 %v3006_v63 }
 0x6b3   : > { %v3008_v17 = vpop.xlane.xlu1 %3007 }
 0x6b4   : > { %v3009_v18 = vmul.f32 0.03125, %v3008_v17 }
 0x6b6   : > { %v3010_v20 = vadd.f32 1e-05, %v3009_v18 }
 0x6b8   : > { %4205 = vrsqrt.f32 %v3010_v20 }
 0x6c5   : > { %v4206_v21 = vpop.eup %4205 }
 0x6c6   : > { %v3012_v23 = vmul.f32 %v4206_v21, %v3004_v61 }
 0x6c8   : > { %v3019_v25 = vmul.f32 %v3714_v22, %v3012_v23 }
 0x6ca   : > { %v3026_v26 = vadd.f32 %v3715_v24, %v3019_v25 }
 0x6cc   : > { %4058 = vmatmul.mubr.msk.f32.vlgmr.msra.gmra.mxu0 %vm1096_vm3, %v3026_v26 }
 0x78c   : > { %v3107_v31 = vpop.f32.mrf.mxu0 }
 0x78d   : > { %v3108_v32 = vadd.f32 %v3716_v30, %v3107_v31 }
 0x78e   : > { %v4059_v33 = vpop.f32.mrf.mxu0 }
 0x78f   : > { %v3111_v34 = vmax.f32 %v3108_v32, 0.0 }
 0x791   : > { %4093 = vmatmul.mubr.f32.vlgmr.msra.gmra.mxu1 %v3111_v34 }
 0x851   : > { %v3201_v36 = vpop.f32.mrf.mxu1 }
 0x852   : > { %v3202_v37 = vadd.f32 %v3718_v35, %v3201_v36 }
 0x853   : > { %v4094_v12 = vpop.f32.mrf.mxu1 }
 0x854   : > { %v3205_v38 = vadd.f32 %v3202_v37, %v3026_v26 }
 0x856   : > { %v3208_v39 = vsel %vm2980_vm9, %v3205_v38, 0.0 }
 0x857   : > { %3209 = vadd.xlane.f32.xlu0 %v3208_v39 }
 0x8e0   : > { %v3210_v40 = vpop.xlane.xlu0 %3209 }
 0x8e1   : > { %v3211_v41 = vmul.f32 0.03125, %v3210_v40 }
 0x8e3   : > { %v3212_v42 = vsub.f32 %v3205_v38, %v3211_v41 }
 0x8e5   : > { %v3213_v43 = vmul.f32 %v3212_v42, %v3212_v42 }
 0x8e7   : > { %v3214_v44 = vsel %vm2980_vm9, %v3213_v43, 0.0 }
 0x8e8   : > { %3215 = vadd.xlane.f32.xlu1 %v3214_v44 }
 0x971   : > { %v3216_v45 = vpop.xlane.xlu1 %3215 }
 0x972   : > { %v3217_v46 = vmul.f32 0.03125, %v3216_v45 }
 0x974   : > { %v3218_v47 = vadd.f32 1e-05, %v3217_v46 }
 0x976   : > { %4207 = vrsqrt.f32 %v3218_v47 }
 0x983   : > { %v4208_v48 = vpop.eup %4207 }
 0x984   : > { %v3220_v50 = vmul.f32 %v4208_v48, %v3212_v42 }
 0x986   : > { %v3227_v52 = vmul.f32 %v3719_v49, %v3220_v50  ;;  %3239 = sbr.rel (%p3721_p1) target bundleno = 2835 (0xb13), region = 116 }
 0x988   : > { %v3234_v53 = vadd.f32 %v3720_v51, %v3227_v52 }
 0x98a   : > { %3235 = vst.msk [vmem:[#allocation2] sm:$0x7f] %vm2980_vm9, %v3234_v53 }
 0x98b   : > { %v3319_v54 = vld [vmem:[%s5089_s2 + $0x18] sm:$0xff]  ;;  %v4307_v55 = vmov 0.0   ;;  %vm4308_vm10 = vmmov 0   ;;  %v3318_v56 = vld [vmem:[%s5089_s2 + $0x10] sm:$0xff]  ;;  %v4309_v57 = vmov 0.14285715  }
 0x98c   : > { %4095 = vmatprep.subr.mxu0 %v4307_v55  ;;  %4097 = vmatprep.mubr.msk.f32.mxu0 %vm4308_vm10, %v4307_v55  ;;  %v3317_v58 = vld [vmem:[%s5089_s2 + $0x8] sm:$0xff]  ;;  %v3316_v59 = vld [vmem:[%s5089_s2] sm:$0xff] }
 0x98d   : > { %4096 = vmatpush3.msk.msra.mxu0 %vm2382_vm6, %v3234_v53  ;;  %4100 = vmatprep.subr.mxu1 %v4307_v55  ;;  %v3320_v62 = vld [vmem:[%s5090_s4] sm:$0x1] }
 0x98e   : > { %4098 = vmatmul.mubr.msk.f32.vlgmr.msra.gmra.mxu0 %vm2378_vm8, %v4309_v57  ;;  %4101 = vmatpush3.msra.mxu1 %v3319_v54 }
 0x98f   : > { %4102 = vmatprep.subr.mxu1 %v4307_v55  ;;  %4108 = vmatprep.mubr.msk.f32.mxu1 %vm4308_vm10, %v4307_v55 }
 0x990   : > { %4103 = vmatpush3.msra.mxu1 %v3318_v56 }
 0x991   : > { %4104 = vmatprep.subr.mxu1 %v4307_v55 }
 0x992   : > { %4105 = vmatpush3.msra.mxu1 %v3317_v58 }
 0x993   : > { %4106 = vmatprep.subr.mxu1 %v4307_v55 }
 0x994   : > { %4107 = vmatpush3.msra.mxu1 %v3316_v59 }
 0xa4e   : > { %v3312_v60 = vpop.f32.mrf.mxu0 }
 0xa4f   : > { %4109 = vmatmul.mubr.msk.f32.vlgmr.msra.gmra.mxu1 %vm1096_vm3, %v3312_v60 }
 0xa50   : > { %v4099_v61 = vpop.f32.mrf.mxu0 }
 0xb0f   : > { %v3390_v63 = vpop.f32.mrf.mxu1 }
 0xb10   : > { %v3391_v0 = vadd.f32 %v3390_v63, %v3320_v62 }
 0xb11   : > { %v4110_v1 = vpop.f32.mrf.mxu1 }
 0xb12   : > { %3394 = vst [vmem:[%s4583_s19] sm:$0x1] %v3391_v0 }
 0xb13 PF: > { %s5091_s6 = sld [smem:[#allocation9_spill]]  ;;  %s3408_s20 = sshll.u32 %s4583_s19, 4  ;;  %s3409_s20 = int_to_ptr.vmem [resolvable:$true] %s3408_s20 }
 0xb14   : > { %s5093_s25 = sld [smem:[#allocation38_spill]]  ;;  %s5094_s23 = sand.u32 1, %s4277_s28  }
 0xb15   : > { %s3396_s7 = scalar_lea.sflag [#allocation4], %s5094_s23  ;;  %s4209_s9 = scalar_lea.vmem %s3409_s20, 16 }
 0xb16   : > { %p4210_p2 = scmp.ne.s32.totalorder %s3409_s20, %s4209_s9  ;;  %s4310_s3 = smov [#allocation3]  }
 0xb17   : > { %s4213_s5 = sshll.u32 %s4310_s3, 4  ;;  %s4214_s5 = int_to_ptr.vmem [resolvable:$false] %s4213_s5 }
 0xb18   : > { %p4211_p4 = pnand %p4210_p2, %p4475_p3  ;;  %s4215_s21 = scalar_lea.vmem %s4214_s5, 32 }
 0xb19   : > { %s3725_s29 = sshll.u32 %s5091_s6, 4  ;;  %p4216_p6 = scmp.lt.s32.totalorder %s3409_s20, %s4214_s5 }
 0xb1a   : > { %s3406_s22 = scalar_lea.hbm %s5093_s25, %s3725_s29  ;;  %p4212_p5 = pneg %p4211_p4 }
 0xb1b   : > { %p4217_p7 = scmp.lt.s32.totalorder %s4215_s21, %s4209_s9 }
 0xb1d   : > { %p4218_p8 = por %p4217_p7, %p4216_p6 }
 0xb1f   : > { %p4219_p10 = pnand %p4218_p8, %p4212_p5 }
 0xb21   : > { %4222 = shalt.err (!%p4219_p10)
}
 0xb22   : > { %s4223_s14 = scalar_lea.hbm %s3406_s22, 16  ;;  %s4227_s24 = scalar_lea.hbm %s5093_s25, 32 }
 0xb23   : > { %p4224_p11 = scmp.ne.s32.totalorder %s3406_s22, %s4223_s14  ;;  %p4228_p0 = scmp.lt.s32.totalorder %s3406_s22, %s5093_s25 }
 0xb24   : > { %p4229_p1 = scmp.lt.s32.totalorder %s4227_s24, %s4223_s14 }
 0xb25   : > { %p4225_p12 = pnand %p4224_p11, %p4475_p3 }
 0xb26   : > { %p4230_p2 = por %p4229_p1, %p4228_p0 }
 0xb27   : > { %p4226_p13 = pneg %p4225_p12 }
 0xb29   : > { %p4231_p4 = pnand %p4230_p2, %p4226_p13 }
 0xb2b   : > { %4234 = shalt.err (!%p4231_p4)
}
 0xb2c   : > { %4111 = dma.vmem_to_hbm [thread:$0]  (%p4475_p3), %s3409_s20, 16, %s3406_s22, %s3396_s7  }
 0xb2d PF: > { %s5095_s4 = sld [smem:[#allocation12_spill]] }
 0xb2e   : > { %s5096_s6 = sld [smem:[#allocation6_spill]] }
 0xb33   : > { %p4117_p5 = scmp.ge.s32.totalorder %s5095_s4, 2 }
 0xb34   : > { %s3420_s1 = sand.u32 1, %s5096_s6  }
 0xb35   : > { %p4114_p6 = pnand %p4117_p5, %p4485_p9  ;;  %s3421_s27 = scalar_lea.sflag [#allocation4], %s3420_s1 }
 0xb37   : > { %p4115_p7 = pneg %p4114_p6 }
 0xb39   : > { %4268 = dma.done.wait (%p4115_p7), %s3421_s27, 16  }
 0xb3a   : > { %4270 = vsyncadd (%p4115_p7), %s3421_s27, 4294967280  ;;  %s35_s1 = sadd.s32 1, %s5095_s4   ;;  %s5098_s23 = sld [smem:[#allocation7_spill]] }
 0xb3b   : > { %p32_p8 = scmp.ge.s32.totalorder %s35_s1, 6   ;;  %s5099_s29 = sld [smem:[#allocation17_spill]] }
 0xb3c   : > { %s5100_s30 = sld [smem:[#allocation10_spill]]  ;;  %s5104_s3 = smov %s4277_s28 }
 0xb3d   : > { %s5101_s4 = sld [smem:[#allocation11_spill]] }
 0xb3e   : > { %s5102_s0 = sld [smem:[#allocation13_spill]] }
 0xb3f   : > { %s5103_s22 = sld [smem:[#allocation15_spill]] }
 0xb40   : > { %s5105_s28 = smov %s5098_s23 }
 0xb41   :  { %34 = sbr.rel (!%p32_p8) target bundleno = 22 (0x16), region = 199 }
 0xb45   : > { %s5106_s23 = smov %s5103_s22 }
 0xb46   :  { %3425 = vsyncpa [#allocation4], 1 }
 0xb47   :  { %3427 = vsyncpa [#allocation4 + $0x1], 1 }

</bundles_post_ra>
